<compile_context>
chip_gen: v6e
topology: v6e:2x2x1
jax: 0.10.0
libtpu: 0.0.40
codegen_flags: <defaults>
</compile_context>

<pallas_src>
import functools

import numpy as np
import jax
import jax.numpy as jnp
from jax.experimental import pallas as pl
from jax.experimental.pallas import tpu as pltpu

_CPAD = 8   # every channel dim is zero-padded to 8 (= one f32 sublane group)
_KDIM = 80  # stacked conv contraction: 9 taps * 8 channels + 8 bias rows


# ---------------------------------------------------------------------------
# Constant 0/1 "plumbing" matrices (built once per trace with numpy).
#
# Flat per-image layouts used inside the kernel (channels on sublanes, flat
# spatial on lanes):
#   * "centered" (conv INPUT):  valid pixel (h, w) of an HxW map sits at flat
#     index (h+1)*(W+2) + (w+1) of a zero-padded (H+2)*(W+2) buffer.
#   * "top-left" (conv OUTPUT): conv result for pixel (h, w) sits at flat index
#     h*(W+2) + w  (out-of-image positions hold garbage; consumers only ever
#     select valid positions).
# ---------------------------------------------------------------------------

def _conv_out_len(h, w):
    """Length of a conv output buffer in the top-left flat layout."""
    return (h + 2) * (w + 2) - 2 * (w + 2) - 2


def _pool_select(h, w, *, to_padded):
    """2x2-max'd conv output (top-left layout, res h x w) -> pooled (h/2 x w/2)
    map, either re-embedded centered into the next zero-padded layout
    (to_padded=True, feeds the next conv) or as a dense row-major core."""
    wp = w + 2
    rows = _conv_out_len(h, w) - wp - 1          # length of the 4-way-max'd buffer
    h2, w2 = h // 2, w // 2
    if to_padded:
        w2p = w2 + 2
        cols = (h2 + 2) * w2p
        dst = lambda i, j: (i + 1) * w2p + (j + 1)
    else:
        cols = h2 * w2
        dst = lambda i, j: i * w2 + j
    m = np.zeros((rows, cols), np.float32)
    for i in range(h2):
        for j in range(w2):
            m[2 * i * wp + 2 * j, dst(i, j)] = 1.0
    return m


def _upsample_select(h_in, w_in, src_len, src_stride):
    """Source map (pixel (i, j) at flat i*src_stride + j) -> nearest-neighbour
    2x upsampled (2h x 2w) map embedded centered in a zero-padded
    (2h+2)*(2w+2) flat layout."""
    wo = 2 * w_in + 2
    m = np.zeros((src_len, (2 * h_in + 2) * wo), np.float32)
    for i in range(h_in):
        for j in range(w_in):
            s = i * src_stride + j
            for di in range(2):
                for dj in range(2):
                    m[s, (2 * i + 1 + di) * wo + (2 * j + 1 + dj)] = 1.0
    return m


def _crop_select(h, w):
    """Conv output (top-left layout) -> dense row-major (h*w) map.  Makes the
    reconstruction's HBM store lane-dense (last dim = h*w)."""
    wp = w + 2
    m = np.zeros((_conv_out_len(h, w), h * w), np.float32)
    for i in range(h):
        for j in range(w):
            m[i * wp + j, i * w + j] = 1.0
    return m


# ---------------------------------------------------------------------------
# Weight packing: 4 convs -> one (4, 8, 80) bf16 slab.
#   columns [8t : 8t+8] = tap t (kh*3+kw) as a (Cout, Cin) matrix,
#   column  72          = bias, columns 73..79 = 0 (multiplied by ones rows).
# ---------------------------------------------------------------------------

def _pack_weight_slab(wb_pairs):
    rows = []
    for (w_hwio, b) in wb_pairs:
        cin, cout = w_hwio.shape[2], w_hwio.shape[3]
        wpad = jnp.pad(w_hwio, ((0, 0), (0, 0),
                                (0, _CPAD - cin), (0, _CPAD - cout)))
        taps = jnp.transpose(wpad, (0, 1, 3, 2)).reshape(9, _CPAD, _CPAD)
        taps = jnp.transpose(taps, (1, 0, 2)).reshape(_CPAD, 9 * _CPAD)
        bias_col = jnp.pad(b, (0, _CPAD - cout)).reshape(_CPAD, 1)
        pad_cols = jnp.zeros((_CPAD, _KDIM - 9 * _CPAD - 1), wpad.dtype)
        rows.append(jnp.concatenate([taps, bias_col, pad_cols], axis=1))
    return jnp.stack(rows, axis=0).astype(jnp.bfloat16)        # (4, 8, 80)


# ---------------------------------------------------------------------------
# The fused Pallas kernel (one grid step == B images).
# ---------------------------------------------------------------------------

def _fused_forward_kernel(x_ref, w_ref,
                          pool1_ref, pool2_ref, up1_ref, up2_ref, crop_ref,
                          z_ref, rx_ref, *, wp0, wp1):
    f32, bf16 = jnp.float32, jnp.bfloat16
    nimg = x_ref.shape[0]

    # Constants: loaded once per grid step, shared by all nimg images.
    pool1, pool2 = pool1_ref[...], pool2_ref[...]
    up1, up2, crop = up1_ref[...], up2_ref[...], crop_ref[...]
    w1, w2, w3, w4 = w_ref[0], w_ref[1], w_ref[2], w_ref[3]     # (8, 80) bf16

    lp0 = x_ref.shape[2]                  # (H+2)*(W+2)
    l0 = lp0 - 2 * wp0 - 2                # full-res conv output length
    l1 = pool1.shape[1] - 2 * wp1 - 2     # half-res conv output length
    # Ones blocks fold the bias into the stacked GEMM (hoisted out of the loop).
    ones0 = jnp.ones((_CPAD, l0), f32)
    ones1 = jnp.ones((_CPAD, l1), f32)

    def conv3x3(a, w_bf, wp, ones, act):
        # a: (8, Lp) f32 centered layout.  One stacked im2col GEMM:
        # RHS rows 0..71 = the 9 shifted lane windows, rows 72..79 = ones
        # (bias).  w_bf: (8, 80) bf16 (taps + bias column).
        l_out = ones.shape[1]
        parts = [a[:, kh * wp + kw: kh * wp + kw + l_out]
                 for kh in range(3) for kw in range(3)]
        parts.append(ones)
        rhs = jnp.concatenate(parts, axis=0).astype(bf16)       # (80, l_out)
        acc = jnp.dot(w_bf, rhs, preferred_element_type=f32)    # (8, l_out)
        if act == "relu":
            return jnp.maximum(acc, 0.0)
        # numerically stable sigmoid (exp argument is always <= 0)
        e = jnp.exp(-jnp.abs(acc))
        r = 1.0 / (1.0 + e)
        return jnp.where(acc >= 0.0, r, e * r)

    def maxpool2x2(y, wp, sel):
        # y: (8, L) top-left layout.  2x2 max = 3 elementwise maxima over
        # shifted lane windows; the 0/1 selection matmul picks the stride-2
        # positions and scatters them into the destination layout.
        span = sel.shape[0]
        m = jnp.maximum(jnp.maximum(y[:, 0:span], y[:, 1:span + 1]),
                        jnp.maximum(y[:, wp:wp + span],
                                    y[:, wp + 1:wp + 1 + span]))
        return jnp.dot(m.astype(bf16), sel, preferred_element_type=f32)

    z_cols = []
    for b in range(nimg):                         # small fully-unrolled loop
        x = x_ref[b]                              # (8, (H+2)*(W+2)) f32

        # ---------------- Encoder ----------------
        e1 = conv3x3(x, w1, wp0, ones0, "relu")
        a1 = maxpool2x2(e1, wp0, pool1)           # centered, H/2 x W/2
        e2 = conv3x3(a1, w2, wp1, ones1, "relu")
        z_b = maxpool2x2(e2, wp1, pool2)          # dense (8, S*S)
        z_cols.append(z_b)

        # ---------------- Decoder ----------------
        d1 = jnp.dot(z_b.astype(bf16), up1, preferred_element_type=f32)
        d1 = conv3x3(d1, w3, wp1, ones1, "relu")
        d2 = jnp.dot(d1.astype(bf16), up2, preferred_element_type=f32)
        d2 = conv3x3(d2, w4, wp0, ones0, "sigmoid")
        rx_ref[b] = jnp.dot(d2.astype(bf16), crop,
                            preferred_element_type=f32).astype(rx_ref.dtype)

    # Lane-dense z store: one (8, nimg*S*S) block per grid step.
    z_ref[0] = jnp.concatenate(z_cols, axis=1).astype(z_ref.dtype)


# ---------------------------------------------------------------------------
# Module-facing wrapper (PyTorch conventions: NCHW in / out).
# ---------------------------------------------------------------------------

def semantic_ae_forward(params, x_nchw, encoded_patch_size, images_per_step=None):
    """Mirrors SemanticAutoencoder.forward: returns (z, z_patches, rx)."""
    n, c_in, h, w = x_nchw.shape
    assert h % 4 == 0 and w % 4 == 0
    c_z = params["enc_w2"].shape[-1]
    c_rx = params["dec_w2"].shape[-1]
    assert max(c_in, c_z, c_rx, params["enc_w1"].shape[-1]) <= _CPAD

    h2, w2, h4, w4 = h // 2, w // 2, h // 4, w // 4
    s2 = h4 * w4
    lp0 = (h + 2) * (w + 2)

    # Images per grid step: amortize the per-step overhead / tiny DMAs, but
    # keep >= 2 grid iterations so v7x's two TensorCores both get work.
    if images_per_step is None:
        bsz = max(1, min(8, n // 2))
    else:
        bsz = max(1, int(images_per_step))
    n_groups = (n + bsz - 1) // bsz
    n_pad = n_groups * bsz

    # Input prep (one-time XLA glue): batch-pad to a multiple of bsz, channel
    # pad to 8, zero-pad spatially, flatten per image.
    xp = jnp.pad(x_nchw.astype(jnp.float32),
                 ((0, n_pad - n), (0, _CPAD - c_in), (1, 1), (1, 1)))
    x_flat = xp.reshape(n_pad, _CPAD, lp0)

    w_slab = _pack_weight_slab([
        (params["enc_w1"], params["enc_b1"]),
        (params["enc_w2"], params["enc_b2"]),
        (params["dec_w1"], params["dec_b1"]),
        (params["dec_w2"], params["dec_b2"]),
    ])

    pool1_np = _pool_select(h, w, to_padded=True)
    pool2_np = _pool_select(h2, w2, to_padded=False)
    up1_np = _upsample_select(h4, w4, src_len=h4 * w4, src_stride=w4)
    up2_np = _upsample_select(h2, w2, src_len=_conv_out_len(h2, w2),
                              src_stride=w2 + 2)
    crop_np = _crop_select(h, w)
    # 0/1 selectors are exact in bf16; this halves constant VMEM/DMA bytes.
    pool1, pool2, up1, up2, crop = (
        jnp.asarray(m, jnp.bfloat16)
        for m in (pool1_np, pool2_np, up1_np, up2_np, crop_np))

    l0, l1 = _conv_out_len(h, w), _conv_out_len(h2, w2)
    sel_elems = int(pool1_np.size + pool2_np.size + up1_np.size
                    + up2_np.size + crop_np.size)
    flops = n_pad * 2 * _CPAD * (_KDIM * 2 * (l0 + l1) + sel_elems)
    bytes_accessed = int(x_flat.size * 4 + n_pad * _CPAD * (h * w + s2) * 4
                         + w_slab.size * 2 + sel_elems * 2)
    cost = pl.CostEstimate(flops=int(flops),
                           transcendentals=int(n_pad * _CPAD * l0),
                           bytes_accessed=bytes_accessed)

    kernel = functools.partial(_fused_forward_kernel, wp0=w + 2, wp1=w2 + 2)

    const_spec = lambda a: pl.BlockSpec(a.shape,
                                        lambda g, _nd=a.ndim: (0,) * _nd)

    z_flat, rx_flat = pl.pallas_call(
        kernel,
        out_shape=(jax.ShapeDtypeStruct((n_groups, _CPAD, bsz * s2), jnp.float32),
                   jax.ShapeDtypeStruct((n_pad, _CPAD, h * w), jnp.float32)),
        grid_spec=pltpu.PrefetchScalarGridSpec(
            num_scalar_prefetch=0,
            grid=(n_groups,),
            in_specs=[
                pl.BlockSpec((bsz, _CPAD, lp0), lambda g: (g, 0, 0)),
                const_spec(w_slab),
                const_spec(pool1), const_spec(pool2),
                const_spec(up1), const_spec(up2), const_spec(crop),
            ],
            out_specs=[
                pl.BlockSpec((1, _CPAD, bsz * s2), lambda g: (g, 0, 0)),
                pl.BlockSpec((bsz, _CPAD, h * w), lambda g: (g, 0, 0)),
            ],
        ),
        compiler_params=pltpu.CompilerParams(
            dimension_semantics=("parallel",)),
        cost_estimate=cost,
    )(x_flat, w_slab, pool1, pool2, up1, up2, crop)

    # Un-pack the lane-dense per-group z layout back to per-image NCHW.
    z_imgs = (z_flat.reshape(n_groups, _CPAD, bsz, s2)
              .transpose(0, 2, 1, 3).reshape(n_pad, _CPAD, s2))
    z_nchw = z_imgs[:n, :c_z].reshape(n, c_z, h4, w4)
    rx_nchw = rx_flat[:n, :c_rx].reshape(n, c_rx, h, w)

    # z_patches: all stride-1 (p x p) windows of z, channel-major flattened,
    # extracted with ONE gather (no per-patch Python slice ops).
    # TODO(synk): Patch.from_spec source not provided; stride-1 row-major
    # sliding windows over the encoded map are assumed.
    p = encoded_patch_size
    rows = jnp.arange(h4 - p + 1)[:, None] + jnp.arange(p)[None, :]   # (Pi, p)
    cols = jnp.arange(w4 - p + 1)[:, None] + jnp.arange(p)[None, :]   # (Pj, p)
    zp = z_nchw[:, :, rows[:, None, :, None], cols[None, :, None, :]]
    zp = jnp.transpose(zp, (0, 2, 3, 1, 4, 5))          # (N, Pi, Pj, C, p, p)
    z_patches = zp.reshape(n, (h4 - p + 1) * (w4 - p + 1), c_z * p * p)

    return z_nchw, z_patches, rx_nchw


# ---------------------------------------------------------------------------
# Stand-in parameters + a pure-XLA reference for a numerical sanity check.
# ---------------------------------------------------------------------------

def init_params(key, input_size, encoded_patch_size, num_prototypes, channels=8):
    ks = jax.random.split(key, 8)
    s = 0.1
    params = {
        "enc_w1": s * jax.random.normal(ks[0], (3, 3, 3, channels), jnp.float32),
        "enc_b1": s * jax.random.normal(ks[1], (channels,), jnp.float32),
        "enc_w2": s * jax.random.normal(ks[2], (3, 3, channels, channels), jnp.float32),
        "enc_b2": s * jax.random.normal(ks[3], (channels,), jnp.float32),
        "dec_w1": s * jax.random.normal(ks[4], (3, 3, channels, channels), jnp.float32),
        "dec_b1": s * jax.random.normal(ks[5], (channels,), jnp.float32),
        "dec_w2": s * jax.random.normal(ks[6], (3, 3, channels, 3), jnp.float32),
        "dec_b2": s * jax.random.normal(ks[7], (3,), jnp.float32),
    }
    # Prototypes: nn.Embedding(num_prototypes + 1, C*p^2, padding_idx=0)
    # (frozen, not used in forward; kept for shape fidelity with __init__).
    dim_prototypes = channels * encoded_patch_size ** 2
    proto = s * jax.random.normal(jax.random.PRNGKey(1),
                                  (num_prototypes + 1, dim_prototypes), jnp.float32)
    params["prototypes"] = proto.at[0].set(0.0)
    return params


def _reference_forward(params, x_nchw):
    def conv(x, wgt, b):
        dn = jax.lax.conv_dimension_numbers(x.shape, wgt.shape,
                                            ("NCHW", "HWIO", "NCHW"))
        y = jax.lax.conv_general_dilated(x, wgt, (1, 1), "SAME",
                                         dimension_numbers=dn)
        return y + b[None, :, None, None]

    def pool(x):
        return jax.lax.reduce_window(x, -jnp.inf, jax.lax.max,
                                     (1, 1, 2, 2), (1, 1, 2, 2), "VALID")

    def up(x):
        return jnp.repeat(jnp.repeat(x, 2, axis=2), 2, axis=3)

    e = jnp.maximum(conv(x_nchw, params["enc_w1"], params["enc_b1"]), 0.0)
    e = pool(e)
    e = jnp.maximum(conv(e, params["enc_w2"], params["enc_b2"]), 0.0)
    z = pool(e)
    d = up(z)
    d = jnp.maximum(conv(d, params["dec_w1"], params["dec_b1"]), 0.0)
    d = up(d)
    rx = jax.nn.sigmoid(conv(d, params["dec_w2"], params["dec_b2"]))
    return z, rx


# ---------------------------------------------------------------------------

if __name__ == "__main__":
    input_size = 16
    encoded_patch_size = 2
    num_prototypes = 5
    channels = 8
    batch = 4            # -> 2 images per grid step, 2 grid steps

    key = jax.random.PRNGKey(0)
    k_param, k_x = jax.random.split(key)
    params = init_params(k_param, input_size, encoded_patch_size,
                         num_prototypes, channels=channels)
    x = jax.random.uniform(k_x, (batch, 3, input_size, input_size), jnp.float32)

    fwd = jax.jit(functools.partial(semantic_ae_forward,
                                    encoded_patch_size=encoded_patch_size))
    z, z_patches, reconstructed_x = fwd(params, x)
    jax.block_until_ready((z, z_patches, reconstructed_x))

    s = input_size // 4
    num_patches = (s - encoded_patch_size + 1) ** 2
    assert z.shape == (batch, channels, s, s)
    assert z_patches.shape == (batch, num_patches,
                               channels * encoded_patch_size ** 2)
    assert reconstructed_x.shape == (batch, 3, input_size, input_size)

    # Numerical check against a pure-f32 XLA reference of the same forward.
    # Weights + matmul operands are stored/cast to bf16 in the kernel (f32
    # accumulation), which bounds the deviation at a few 1e-3; use a 3e-2 band.
    z_ref, rx_ref = jax.jit(_reference_forward)(params, x)
    assert float(jnp.max(jnp.abs(z - z_ref))) < 3e-2
    assert float(jnp.max(jnp.abs(reconstructed_x - rx_ref))) < 3e-2

    print("KERNEL_OK")
</pallas_src>

<mosaic_0001>
module attributes {stable_mosaic.version = 11 : i64} {
  func.func @_fused_forward_kernel(%arg0: i32, %arg1: memref<2x8x324xf32, #tpu.memory_space<vmem>>, %arg2: memref<4x8x80xbf16, #tpu.memory_space<vmem>>, %arg3: memref<267x100xbf16, #tpu.memory_space<vmem>>, %arg4: memref<67x16xbf16, #tpu.memory_space<vmem>>, %arg5: memref<16x100xbf16, #tpu.memory_space<vmem>>, %arg6: memref<78x324xbf16, #tpu.memory_space<vmem>>, %arg7: memref<286x256xbf16, #tpu.memory_space<vmem>>, %arg8: memref<1x8x32xf32, #tpu.memory_space<vmem>>, %arg9: memref<2x8x256xf32, #tpu.memory_space<vmem>>) attributes {dimension_semantics = [#tpu.dimension_semantics<parallel>], iteration_bounds = array<i64: 2>, scalar_prefetch = 0 : i64, scratch_operands = 0 : i64, tpu.core_type = #tpu.core_type<tc>, window_params = [{transform_indices = @transform_0, window_bounds = array<i64: 2, 8, 324>}, {pipeline_mode = #tpu.pipeline_mode<synchronous>, transform_indices = @transform_1, window_bounds = array<i64: 4, 8, 80>}, {pipeline_mode = #tpu.pipeline_mode<synchronous>, transform_indices = @transform_2, window_bounds = array<i64: 267, 100>}, {pipeline_mode = #tpu.pipeline_mode<synchronous>, transform_indices = @transform_3, window_bounds = array<i64: 67, 16>}, {pipeline_mode = #tpu.pipeline_mode<synchronous>, transform_indices = @transform_4, window_bounds = array<i64: 16, 100>}, {pipeline_mode = #tpu.pipeline_mode<synchronous>, transform_indices = @transform_5, window_bounds = array<i64: 78, 324>}, {pipeline_mode = #tpu.pipeline_mode<synchronous>, transform_indices = @transform_6, window_bounds = array<i64: 286, 256>}, {transform_indices = @transform_7, window_bounds = array<i64: 1, 8, 32>}, {transform_indices = @transform_8, window_bounds = array<i64: 2, 8, 256>}]} {
    %c0 = arith.constant 0 : index
    %c0_0 = arith.constant 0 : index
    %0 = vector.load %arg3[%c0, %c0_0] : memref<267x100xbf16, #tpu.memory_space<vmem>>, vector<267x100xbf16>
    %c0_1 = arith.constant 0 : index
    %c0_2 = arith.constant 0 : index
    %1 = vector.load %arg4[%c0_1, %c0_2] : memref<67x16xbf16, #tpu.memory_space<vmem>>, vector<67x16xbf16>
    %c0_3 = arith.constant 0 : index
    %c0_4 = arith.constant 0 : index
    %2 = vector.load %arg5[%c0_3, %c0_4] : memref<16x100xbf16, #tpu.memory_space<vmem>>, vector<16x100xbf16>
    %c0_5 = arith.constant 0 : index
    %c0_6 = arith.constant 0 : index
    %3 = vector.load %arg6[%c0_5, %c0_6] : memref<78x324xbf16, #tpu.memory_space<vmem>>, vector<78x324xbf16>
    %c0_7 = arith.constant 0 : index
    %c0_8 = arith.constant 0 : index
    %4 = vector.load %arg7[%c0_7, %c0_8] : memref<286x256xbf16, #tpu.memory_space<vmem>>, vector<286x256xbf16>
    %c0_9 = arith.constant 0 : index
    %c0_10 = arith.constant 0 : index
    %c0_11 = arith.constant 0 : index
    %5 = vector.load %arg2[%c0_9, %c0_10, %c0_11] : memref<4x8x80xbf16, #tpu.memory_space<vmem>>, vector<1x8x80xbf16>
    %6 = vector.shape_cast %5 : vector<1x8x80xbf16> to vector<8x80xbf16>
    %c1 = arith.constant 1 : index
    %c0_12 = arith.constant 0 : index
    %c0_13 = arith.constant 0 : index
    %7 = vector.load %arg2[%c1, %c0_12, %c0_13] : memref<4x8x80xbf16, #tpu.memory_space<vmem>>, vector<1x8x80xbf16>
    %8 = vector.shape_cast %7 : vector<1x8x80xbf16> to vector<8x80xbf16>
    %c2 = arith.constant 2 : index
    %c0_14 = arith.constant 0 : index
    %c0_15 = arith.constant 0 : index
    %9 = vector.load %arg2[%c2, %c0_14, %c0_15] : memref<4x8x80xbf16, #tpu.memory_space<vmem>>, vector<1x8x80xbf16>
    %10 = vector.shape_cast %9 : vector<1x8x80xbf16> to vector<8x80xbf16>
    %c3 = arith.constant 3 : index
    %c0_16 = arith.constant 0 : index
    %c0_17 = arith.constant 0 : index
    %11 = vector.load %arg2[%c3, %c0_16, %c0_17] : memref<4x8x80xbf16, #tpu.memory_space<vmem>>, vector<1x8x80xbf16>
    %12 = vector.shape_cast %11 : vector<1x8x80xbf16> to vector<8x80xbf16>
    %cst = arith.constant 1.000000e+00 : f32
    %13 = vector.broadcast %cst : f32 to vector<8x286xf32>
    %cst_18 = arith.constant 1.000000e+00 : f32
    %14 = vector.broadcast %cst_18 : f32 to vector<8x78xf32>
    %c0_19 = arith.constant 0 : index
    %c0_20 = arith.constant 0 : index
    %c0_21 = arith.constant 0 : index
    %15 = vector.load %arg1[%c0_19, %c0_20, %c0_21] : memref<2x8x324xf32, #tpu.memory_space<vmem>>, vector<1x8x324xf32>
    %16 = vector.shape_cast %15 : vector<1x8x324xf32> to vector<8x324xf32>
    %17 = vector.extract_strided_slice %16 {offsets = [0, 0], sizes = [8, 286], strides = [1, 1]} : vector<8x324xf32> to vector<8x286xf32>
    %18 = vector.extract_strided_slice %16 {offsets = [0, 1], sizes = [8, 286], strides = [1, 1]} : vector<8x324xf32> to vector<8x286xf32>
    %19 = vector.extract_strided_slice %16 {offsets = [0, 2], sizes = [8, 286], strides = [1, 1]} : vector<8x324xf32> to vector<8x286xf32>
    %20 = vector.extract_strided_slice %16 {offsets = [0, 18], sizes = [8, 286], strides = [1, 1]} : vector<8x324xf32> to vector<8x286xf32>
    %21 = vector.extract_strided_slice %16 {offsets = [0, 19], sizes = [8, 286], strides = [1, 1]} : vector<8x324xf32> to vector<8x286xf32>
    %22 = vector.extract_strided_slice %16 {offsets = [0, 20], sizes = [8, 286], strides = [1, 1]} : vector<8x324xf32> to vector<8x286xf32>
    %23 = vector.extract_strided_slice %16 {offsets = [0, 36], sizes = [8, 286], strides = [1, 1]} : vector<8x324xf32> to vector<8x286xf32>
    %24 = vector.extract_strided_slice %16 {offsets = [0, 37], sizes = [8, 286], strides = [1, 1]} : vector<8x324xf32> to vector<8x286xf32>
    %25 = vector.extract_strided_slice %16 {offsets = [0, 38], sizes = [8, 286], strides = [1, 1]} : vector<8x324xf32> to vector<8x286xf32>
    %26 = tpu.concatenate %17, %18, %19, %20, %21, %22, %23, %24, %25, %13 in 0 : vector<8x286xf32>, vector<8x286xf32>, vector<8x286xf32>, vector<8x286xf32>, vector<8x286xf32>, vector<8x286xf32>, vector<8x286xf32>, vector<8x286xf32>, vector<8x286xf32>, vector<8x286xf32> -> vector<80x286xf32>
    %27 = arith.truncf %26 : vector<80x286xf32> to vector<80x286xbf16>
    %cst_22 = arith.constant dense<0.000000e+00> : vector<8x286xf32>
    %28 = tpu.matmul %6, %27, %cst_22 {dimension_numbers = #tpu.dot_dimension_numbers<[1], [0], [0], [1], [0, 0, 1, 1], [], []>} : vector<8x80xbf16>, vector<80x286xbf16>, vector<8x286xf32> -> vector<8x286xf32>
    %cst_23 = arith.constant 0.000000e+00 : f32
    %29 = vector.broadcast %cst_23 : f32 to vector<8x286xf32>
    %30 = arith.maximumf %28, %29 : vector<8x286xf32>
    %31 = vector.extract_strided_slice %30 {offsets = [0, 0], sizes = [8, 267], strides = [1, 1]} : vector<8x286xf32> to vector<8x267xf32>
    %32 = vector.extract_strided_slice %30 {offsets = [0, 1], sizes = [8, 267], strides = [1, 1]} : vector<8x286xf32> to vector<8x267xf32>
    %33 = arith.maximumf %31, %32 : vector<8x267xf32>
    %34 = vector.extract_strided_slice %30 {offsets = [0, 18], sizes = [8, 267], strides = [1, 1]} : vector<8x286xf32> to vector<8x267xf32>
    %35 = vector.extract_strided_slice %30 {offsets = [0, 19], sizes = [8, 267], strides = [1, 1]} : vector<8x286xf32> to vector<8x267xf32>
    %36 = arith.maximumf %34, %35 : vector<8x267xf32>
    %37 = arith.maximumf %33, %36 : vector<8x267xf32>
    %38 = arith.truncf %37 : vector<8x267xf32> to vector<8x267xbf16>
    %cst_24 = arith.constant dense<0.000000e+00> : vector<8x100xf32>
    %39 = tpu.matmul %38, %0, %cst_24 {dimension_numbers = #tpu.dot_dimension_numbers<[1], [0], [0], [1], [0, 0, 1, 1], [], []>} : vector<8x267xbf16>, vector<267x100xbf16>, vector<8x100xf32> -> vector<8x100xf32>
    %40 = vector.extract_strided_slice %39 {offsets = [0, 0], sizes = [8, 78], strides = [1, 1]} : vector<8x100xf32> to vector<8x78xf32>
    %41 = vector.extract_strided_slice %39 {offsets = [0, 1], sizes = [8, 78], strides = [1, 1]} : vector<8x100xf32> to vector<8x78xf32>
    %42 = vector.extract_strided_slice %39 {offsets = [0, 2], sizes = [8, 78], strides = [1, 1]} : vector<8x100xf32> to vector<8x78xf32>
    %43 = vector.extract_strided_slice %39 {offsets = [0, 10], sizes = [8, 78], strides = [1, 1]} : vector<8x100xf32> to vector<8x78xf32>
    %44 = vector.extract_strided_slice %39 {offsets = [0, 11], sizes = [8, 78], strides = [1, 1]} : vector<8x100xf32> to vector<8x78xf32>
    %45 = vector.extract_strided_slice %39 {offsets = [0, 12], sizes = [8, 78], strides = [1, 1]} : vector<8x100xf32> to vector<8x78xf32>
    %46 = vector.extract_strided_slice %39 {offsets = [0, 20], sizes = [8, 78], strides = [1, 1]} : vector<8x100xf32> to vector<8x78xf32>
    %47 = vector.extract_strided_slice %39 {offsets = [0, 21], sizes = [8, 78], strides = [1, 1]} : vector<8x100xf32> to vector<8x78xf32>
    %48 = vector.extract_strided_slice %39 {offsets = [0, 22], sizes = [8, 78], strides = [1, 1]} : vector<8x100xf32> to vector<8x78xf32>
    %49 = tpu.concatenate %40, %41, %42, %43, %44, %45, %46, %47, %48, %14 in 0 : vector<8x78xf32>, vector<8x78xf32>, vector<8x78xf32>, vector<8x78xf32>, vector<8x78xf32>, vector<8x78xf32>, vector<8x78xf32>, vector<8x78xf32>, vector<8x78xf32>, vector<8x78xf32> -> vector<80x78xf32>
    %50 = arith.truncf %49 : vector<80x78xf32> to vector<80x78xbf16>
    %cst_25 = arith.constant dense<0.000000e+00> : vector<8x78xf32>
    %51 = tpu.matmul %8, %50, %cst_25 {dimension_numbers = #tpu.dot_dimension_numbers<[1], [0], [0], [1], [0, 0, 1, 1], [], []>} : vector<8x80xbf16>, vector<80x78xbf16>, vector<8x78xf32> -> vector<8x78xf32>
    %cst_26 = arith.constant 0.000000e+00 : f32
    %52 = vector.broadcast %cst_26 : f32 to vector<8x78xf32>
    %53 = arith.maximumf %51, %52 : vector<8x78xf32>
    %54 = vector.extract_strided_slice %53 {offsets = [0, 0], sizes = [8, 67], strides = [1, 1]} : vector<8x78xf32> to vector<8x67xf32>
    %55 = vector.extract_strided_slice %53 {offsets = [0, 1], sizes = [8, 67], strides = [1, 1]} : vector<8x78xf32> to vector<8x67xf32>
    %56 = arith.maximumf %54, %55 : vector<8x67xf32>
    %57 = vector.extract_strided_slice %53 {offsets = [0, 10], sizes = [8, 67], strides = [1, 1]} : vector<8x78xf32> to vector<8x67xf32>
    %58 = vector.extract_strided_slice %53 {offsets = [0, 11], sizes = [8, 67], strides = [1, 1]} : vector<8x78xf32> to vector<8x67xf32>
    %59 = arith.maximumf %57, %58 : vector<8x67xf32>
    %60 = arith.maximumf %56, %59 : vector<8x67xf32>
    %61 = arith.truncf %60 : vector<8x67xf32> to vector<8x67xbf16>
    %cst_27 = arith.constant dense<0.000000e+00> : vector<8x16xf32>
    %62 = tpu.matmul %61, %1, %cst_27 {dimension_numbers = #tpu.dot_dimension_numbers<[1], [0], [0], [1], [0, 0, 1, 1], [], []>} : vector<8x67xbf16>, vector<67x16xbf16>, vector<8x16xf32> -> vector<8x16xf32>
    %63 = arith.truncf %62 : vector<8x16xf32> to vector<8x16xbf16>
    %cst_28 = arith.constant dense<0.000000e+00> : vector<8x100xf32>
    %64 = tpu.matmul %63, %2, %cst_28 {dimension_numbers = #tpu.dot_dimension_numbers<[1], [0], [0], [1], [0, 0, 1, 1], [], []>} : vector<8x16xbf16>, vector<16x100xbf16>, vector<8x100xf32> -> vector<8x100xf32>
    %65 = vector.extract_strided_slice %64 {offsets = [0, 0], sizes = [8, 78], strides = [1, 1]} : vector<8x100xf32> to vector<8x78xf32>
    %66 = vector.extract_strided_slice %64 {offsets = [0, 1], sizes = [8, 78], strides = [1, 1]} : vector<8x100xf32> to vector<8x78xf32>
    %67 = vector.extract_strided_slice %64 {offsets = [0, 2], sizes = [8, 78], strides = [1, 1]} : vector<8x100xf32> to vector<8x78xf32>
    %68 = vector.extract_strided_slice %64 {offsets = [0, 10], sizes = [8, 78], strides = [1, 1]} : vector<8x100xf32> to vector<8x78xf32>
    %69 = vector.extract_strided_slice %64 {offsets = [0, 11], sizes = [8, 78], strides = [1, 1]} : vector<8x100xf32> to vector<8x78xf32>
    %70 = vector.extract_strided_slice %64 {offsets = [0, 12], sizes = [8, 78], strides = [1, 1]} : vector<8x100xf32> to vector<8x78xf32>
    %71 = vector.extract_strided_slice %64 {offsets = [0, 20], sizes = [8, 78], strides = [1, 1]} : vector<8x100xf32> to vector<8x78xf32>
    %72 = vector.extract_strided_slice %64 {offsets = [0, 21], sizes = [8, 78], strides = [1, 1]} : vector<8x100xf32> to vector<8x78xf32>
    %73 = vector.extract_strided_slice %64 {offsets = [0, 22], sizes = [8, 78], strides = [1, 1]} : vector<8x100xf32> to vector<8x78xf32>
    %74 = tpu.concatenate %65, %66, %67, %68, %69, %70, %71, %72, %73, %14 in 0 : vector<8x78xf32>, vector<8x78xf32>, vector<8x78xf32>, vector<8x78xf32>, vector<8x78xf32>, vector<8x78xf32>, vector<8x78xf32>, vector<8x78xf32>, vector<8x78xf32>, vector<8x78xf32> -> vector<80x78xf32>
    %75 = arith.truncf %74 : vector<80x78xf32> to vector<80x78xbf16>
    %cst_29 = arith.constant dense<0.000000e+00> : vector<8x78xf32>
    %76 = tpu.matmul %10, %75, %cst_29 {dimension_numbers = #tpu.dot_dimension_numbers<[1], [0], [0], [1], [0, 0, 1, 1], [], []>} : vector<8x80xbf16>, vector<80x78xbf16>, vector<8x78xf32> -> vector<8x78xf32>
    %cst_30 = arith.constant 0.000000e+00 : f32
    %77 = vector.broadcast %cst_30 : f32 to vector<8x78xf32>
    %78 = arith.maximumf %76, %77 : vector<8x78xf32>
    %79 = arith.truncf %78 : vector<8x78xf32> to vector<8x78xbf16>
    %cst_31 = arith.constant dense<0.000000e+00> : vector<8x324xf32>
    %80 = tpu.matmul %79, %3, %cst_31 {dimension_numbers = #tpu.dot_dimension_numbers<[1], [0], [0], [1], [0, 0, 1, 1], [], []>} : vector<8x78xbf16>, vector<78x324xbf16>, vector<8x324xf32> -> vector<8x324xf32>
    %81 = vector.extract_strided_slice %80 {offsets = [0, 0], sizes = [8, 286], strides = [1, 1]} : vector<8x324xf32> to vector<8x286xf32>
    %82 = vector.extract_strided_slice %80 {offsets = [0, 1], sizes = [8, 286], strides = [1, 1]} : vector<8x324xf32> to vector<8x286xf32>
    %83 = vector.extract_strided_slice %80 {offsets = [0, 2], sizes = [8, 286], strides = [1, 1]} : vector<8x324xf32> to vector<8x286xf32>
    %84 = vector.extract_strided_slice %80 {offsets = [0, 18], sizes = [8, 286], strides = [1, 1]} : vector<8x324xf32> to vector<8x286xf32>
    %85 = vector.extract_strided_slice %80 {offsets = [0, 19], sizes = [8, 286], strides = [1, 1]} : vector<8x324xf32> to vector<8x286xf32>
    %86 = vector.extract_strided_slice %80 {offsets = [0, 20], sizes = [8, 286], strides = [1, 1]} : vector<8x324xf32> to vector<8x286xf32>
    %87 = vector.extract_strided_slice %80 {offsets = [0, 36], sizes = [8, 286], strides = [1, 1]} : vector<8x324xf32> to vector<8x286xf32>
    %88 = vector.extract_strided_slice %80 {offsets = [0, 37], sizes = [8, 286], strides = [1, 1]} : vector<8x324xf32> to vector<8x286xf32>
    %89 = vector.extract_strided_slice %80 {offsets = [0, 38], sizes = [8, 286], strides = [1, 1]} : vector<8x324xf32> to vector<8x286xf32>
    %90 = tpu.concatenate %81, %82, %83, %84, %85, %86, %87, %88, %89, %13 in 0 : vector<8x286xf32>, vector<8x286xf32>, vector<8x286xf32>, vector<8x286xf32>, vector<8x286xf32>, vector<8x286xf32>, vector<8x286xf32>, vector<8x286xf32>, vector<8x286xf32>, vector<8x286xf32> -> vector<80x286xf32>
    %91 = arith.truncf %90 : vector<80x286xf32> to vector<80x286xbf16>
    %cst_32 = arith.constant dense<0.000000e+00> : vector<8x286xf32>
    %92 = tpu.matmul %12, %91, %cst_32 {dimension_numbers = #tpu.dot_dimension_numbers<[1], [0], [0], [1], [0, 0, 1, 1], [], []>} : vector<8x80xbf16>, vector<80x286xbf16>, vector<8x286xf32> -> vector<8x286xf32>
    %93 = math.absf %92 : vector<8x286xf32>
    %cst_33 = arith.constant 0.000000e+00 : f32
    %94 = vector.broadcast %cst_33 : f32 to vector<8x286xf32>
    %95 = arith.subf %94, %93 : vector<8x286xf32>
    %96 = math.exp %95 : vector<8x286xf32>
    %cst_34 = arith.constant 1.000000e+00 : f32
    %97 = vector.broadcast %cst_34 : f32 to vector<8x286xf32>
    %98 = arith.addf %97, %96 : vector<8x286xf32>
    %cst_35 = arith.constant 1.000000e+00 : f32
    %99 = vector.broadcast %cst_35 : f32 to vector<8x286xf32>
    %100 = arith.divf %99, %98 : vector<8x286xf32>
    %cst_36 = arith.constant 0.000000e+00 : f32
    %101 = vector.broadcast %cst_36 : f32 to vector<8x286xf32>
    %102 = arith.cmpf oge, %92, %101 : vector<8x286xf32>
    %103 = arith.mulf %96, %100 : vector<8x286xf32>
    %104 = arith.select %102, %100, %103 : vector<8x286xi1>, vector<8x286xf32>
    %105 = arith.truncf %104 : vector<8x286xf32> to vector<8x286xbf16>
    %cst_37 = arith.constant dense<0.000000e+00> : vector<8x256xf32>
    %106 = tpu.matmul %105, %4, %cst_37 {dimension_numbers = #tpu.dot_dimension_numbers<[1], [0], [0], [1], [0, 0, 1, 1], [], []>} : vector<8x286xbf16>, vector<286x256xbf16>, vector<8x256xf32> -> vector<8x256xf32>
    %c0_38 = arith.constant 0 : index
    %c0_39 = arith.constant 0 : index
    %c0_40 = arith.constant 0 : index
    %107 = vector.load %arg9[%c0_38, %c0_39, %c0_40] : memref<2x8x256xf32, #tpu.memory_space<vmem>>, vector<1x8x256xf32>
    %108 = vector.shape_cast %107 : vector<1x8x256xf32> to vector<8x256xf32>
    %109 = vector.shape_cast %106 : vector<8x256xf32> to vector<1x8x256xf32>
    tpu.vector_store %arg9[%c0_38, %c0_39, %c0_40], %109 {strides = array<i32>} : memref<2x8x256xf32, #tpu.memory_space<vmem>>, vector<1x8x256xf32>,
    %c1_41 = arith.constant 1 : index
    %c0_42 = arith.constant 0 : index
    %c0_43 = arith.constant 0 : index
    %110 = vector.load %arg1[%c1_41, %c0_42, %c0_43] : memref<2x8x324xf32, #tpu.memory_space<vmem>>, vector<1x8x324xf32>
    %111 = vector.shape_cast %110 : vector<1x8x324xf32> to vector<8x324xf32>
    %112 = vector.extract_strided_slice %111 {offsets = [0, 0], sizes = [8, 286], strides = [1, 1]} : vector<8x324xf32> to vector<8x286xf32>
    %113 = vector.extract_strided_slice %111 {offsets = [0, 1], sizes = [8, 286], strides = [1, 1]} : vector<8x324xf32> to vector<8x286xf32>
    %114 = vector.extract_strided_slice %111 {offsets = [0, 2], sizes = [8, 286], strides = [1, 1]} : vector<8x324xf32> to vector<8x286xf32>
    %115 = vector.extract_strided_slice %111 {offsets = [0, 18], sizes = [8, 286], strides = [1, 1]} : vector<8x324xf32> to vector<8x286xf32>
    %116 = vector.extract_strided_slice %111 {offsets = [0, 19], sizes = [8, 286], strides = [1, 1]} : vector<8x324xf32> to vector<8x286xf32>
    %117 = vector.extract_strided_slice %111 {offsets = [0, 20], sizes = [8, 286], strides = [1, 1]} : vector<8x324xf32> to vector<8x286xf32>
    %118 = vector.extract_strided_slice %111 {offsets = [0, 36], sizes = [8, 286], strides = [1, 1]} : vector<8x324xf32> to vector<8x286xf32>
    %119 = vector.extract_strided_slice %111 {offsets = [0, 37], sizes = [8, 286], strides = [1, 1]} : vector<8x324xf32> to vector<8x286xf32>
    %120 = vector.extract_strided_slice %111 {offsets = [0, 38], sizes = [8, 286], strides = [1, 1]} : vector<8x324xf32> to vector<8x286xf32>
    %121 = tpu.concatenate %112, %113, %114, %115, %116, %117, %118, %119, %120, %13 in 0 : vector<8x286xf32>, vector<8x286xf32>, vector<8x286xf32>, vector<8x286xf32>, vector<8x286xf32>, vector<8x286xf32>, vector<8x286xf32>, vector<8x286xf32>, vector<8x286xf32>, vector<8x286xf32> -> vector<80x286xf32>
    %122 = arith.truncf %121 : vector<80x286xf32> to vector<80x286xbf16>
    %cst_44 = arith.constant dense<0.000000e+00> : vector<8x286xf32>
    %123 = tpu.matmul %6, %122, %cst_44 {dimension_numbers = #tpu.dot_dimension_numbers<[1], [0], [0], [1], [0, 0, 1, 1], [], []>} : vector<8x80xbf16>, vector<80x286xbf16>, vector<8x286xf32> -> vector<8x286xf32>
    %cst_45 = arith.constant 0.000000e+00 : f32
    %124 = vector.broadcast %cst_45 : f32 to vector<8x286xf32>
    %125 = arith.maximumf %123, %124 : vector<8x286xf32>
    %126 = vector.extract_strided_slice %125 {offsets = [0, 0], sizes = [8, 267], strides = [1, 1]} : vector<8x286xf32> to vector<8x267xf32>
    %127 = vector.extract_strided_slice %125 {offsets = [0, 1], sizes = [8, 267], strides = [1, 1]} : vector<8x286xf32> to vector<8x267xf32>
    %128 = arith.maximumf %126, %127 : vector<8x267xf32>
    %129 = vector.extract_strided_slice %125 {offsets = [0, 18], sizes = [8, 267], strides = [1, 1]} : vector<8x286xf32> to vector<8x267xf32>
    %130 = vector.extract_strided_slice %125 {offsets = [0, 19], sizes = [8, 267], strides = [1, 1]} : vector<8x286xf32> to vector<8x267xf32>
    %131 = arith.maximumf %129, %130 : vector<8x267xf32>
    %132 = arith.maximumf %128, %131 : vector<8x267xf32>
    %133 = arith.truncf %132 : vector<8x267xf32> to vector<8x267xbf16>
    %cst_46 = arith.constant dense<0.000000e+00> : vector<8x100xf32>
    %134 = tpu.matmul %133, %0, %cst_46 {dimension_numbers = #tpu.dot_dimension_numbers<[1], [0], [0], [1], [0, 0, 1, 1], [], []>} : vector<8x267xbf16>, vector<267x100xbf16>, vector<8x100xf32> -> vector<8x100xf32>
    %135 = vector.extract_strided_slice %134 {offsets = [0, 0], sizes = [8, 78], strides = [1, 1]} : vector<8x100xf32> to vector<8x78xf32>
    %136 = vector.extract_strided_slice %134 {offsets = [0, 1], sizes = [8, 78], strides = [1, 1]} : vector<8x100xf32> to vector<8x78xf32>
    %137 = vector.extract_strided_slice %134 {offsets = [0, 2], sizes = [8, 78], strides = [1, 1]} : vector<8x100xf32> to vector<8x78xf32>
    %138 = vector.extract_strided_slice %134 {offsets = [0, 10], sizes = [8, 78], strides = [1, 1]} : vector<8x100xf32> to vector<8x78xf32>
    %139 = vector.extract_strided_slice %134 {offsets = [0, 11], sizes = [8, 78], strides = [1, 1]} : vector<8x100xf32> to vector<8x78xf32>
    %140 = vector.extract_strided_slice %134 {offsets = [0, 12], sizes = [8, 78], strides = [1, 1]} : vector<8x100xf32> to vector<8x78xf32>
    %141 = vector.extract_strided_slice %134 {offsets = [0, 20], sizes = [8, 78], strides = [1, 1]} : vector<8x100xf32> to vector<8x78xf32>
    %142 = vector.extract_strided_slice %134 {offsets = [0, 21], sizes = [8, 78], strides = [1, 1]} : vector<8x100xf32> to vector<8x78xf32>
    %143 = vector.extract_strided_slice %134 {offsets = [0, 22], sizes = [8, 78], strides = [1, 1]} : vector<8x100xf32> to vector<8x78xf32>
    %144 = tpu.concatenate %135, %136, %137, %138, %139, %140, %141, %142, %143, %14 in 0 : vector<8x78xf32>, vector<8x78xf32>, vector<8x78xf32>, vector<8x78xf32>, vector<8x78xf32>, vector<8x78xf32>, vector<8x78xf32>, vector<8x78xf32>, vector<8x78xf32>, vector<8x78xf32> -> vector<80x78xf32>
    %145 = arith.truncf %144 : vector<80x78xf32> to vector<80x78xbf16>
    %cst_47 = arith.constant dense<0.000000e+00> : vector<8x78xf32>
    %146 = tpu.matmul %8, %145, %cst_47 {dimension_numbers = #tpu.dot_dimension_numbers<[1], [0], [0], [1], [0, 0, 1, 1], [], []>} : vector<8x80xbf16>, vector<80x78xbf16>, vector<8x78xf32> -> vector<8x78xf32>
    %cst_48 = arith.constant 0.000000e+00 : f32
    %147 = vector.broadcast %cst_48 : f32 to vector<8x78xf32>
    %148 = arith.maximumf %146, %147 : vector<8x78xf32>
    %149 = vector.extract_strided_slice %148 {offsets = [0, 0], sizes = [8, 67], strides = [1, 1]} : vector<8x78xf32> to vector<8x67xf32>
    %150 = vector.extract_strided_slice %148 {offsets = [0, 1], sizes = [8, 67], strides = [1, 1]} : vector<8x78xf32> to vector<8x67xf32>
    %151 = arith.maximumf %149, %150 : vector<8x67xf32>
    %152 = vector.extract_strided_slice %148 {offsets = [0, 10], sizes = [8, 67], strides = [1, 1]} : vector<8x78xf32> to vector<8x67xf32>
    %153 = vector.extract_strided_slice %148 {offsets = [0, 11], sizes = [8, 67], strides = [1, 1]} : vector<8x78xf32> to vector<8x67xf32>
    %154 = arith.maximumf %152, %153 : vector<8x67xf32>
    %155 = arith.maximumf %151, %154 : vector<8x67xf32>
    %156 = arith.truncf %155 : vector<8x67xf32> to vector<8x67xbf16>
    %cst_49 = arith.constant dense<0.000000e+00> : vector<8x16xf32>
    %157 = tpu.matmul %156, %1, %cst_49 {dimension_numbers = #tpu.dot_dimension_numbers<[1], [0], [0], [1], [0, 0, 1, 1], [], []>} : vector<8x67xbf16>, vector<67x16xbf16>, vector<8x16xf32> -> vector<8x16xf32>
    %158 = arith.truncf %157 : vector<8x16xf32> to vector<8x16xbf16>
    %cst_50 = arith.constant dense<0.000000e+00> : vector<8x100xf32>
    %159 = tpu.matmul %158, %2, %cst_50 {dimension_numbers = #tpu.dot_dimension_numbers<[1], [0], [0], [1], [0, 0, 1, 1], [], []>} : vector<8x16xbf16>, vector<16x100xbf16>, vector<8x100xf32> -> vector<8x100xf32>
    %160 = vector.extract_strided_slice %159 {offsets = [0, 0], sizes = [8, 78], strides = [1, 1]} : vector<8x100xf32> to vector<8x78xf32>
    %161 = vector.extract_strided_slice %159 {offsets = [0, 1], sizes = [8, 78], strides = [1, 1]} : vector<8x100xf32> to vector<8x78xf32>
    %162 = vector.extract_strided_slice %159 {offsets = [0, 2], sizes = [8, 78], strides = [1, 1]} : vector<8x100xf32> to vector<8x78xf32>
    %163 = vector.extract_strided_slice %159 {offsets = [0, 10], sizes = [8, 78], strides = [1, 1]} : vector<8x100xf32> to vector<8x78xf32>
    %164 = vector.extract_strided_slice %159 {offsets = [0, 11], sizes = [8, 78], strides = [1, 1]} : vector<8x100xf32> to vector<8x78xf32>
    %165 = vector.extract_strided_slice %159 {offsets = [0, 12], sizes = [8, 78], strides = [1, 1]} : vector<8x100xf32> to vector<8x78xf32>
    %166 = vector.extract_strided_slice %159 {offsets = [0, 20], sizes = [8, 78], strides = [1, 1]} : vector<8x100xf32> to vector<8x78xf32>
    %167 = vector.extract_strided_slice %159 {offsets = [0, 21], sizes = [8, 78], strides = [1, 1]} : vector<8x100xf32> to vector<8x78xf32>
    %168 = vector.extract_strided_slice %159 {offsets = [0, 22], sizes = [8, 78], strides = [1, 1]} : vector<8x100xf32> to vector<8x78xf32>
    %169 = tpu.concatenate %160, %161, %162, %163, %164, %165, %166, %167, %168, %14 in 0 : vector<8x78xf32>, vector<8x78xf32>, vector<8x78xf32>, vector<8x78xf32>, vector<8x78xf32>, vector<8x78xf32>, vector<8x78xf32>, vector<8x78xf32>, vector<8x78xf32>, vector<8x78xf32> -> vector<80x78xf32>
    %170 = arith.truncf %169 : vector<80x78xf32> to vector<80x78xbf16>
    %cst_51 = arith.constant dense<0.000000e+00> : vector<8x78xf32>
    %171 = tpu.matmul %10, %170, %cst_51 {dimension_numbers = #tpu.dot_dimension_numbers<[1], [0], [0], [1], [0, 0, 1, 1], [], []>} : vector<8x80xbf16>, vector<80x78xbf16>, vector<8x78xf32> -> vector<8x78xf32>
    %cst_52 = arith.constant 0.000000e+00 : f32
    %172 = vector.broadcast %cst_52 : f32 to vector<8x78xf32>
    %173 = arith.maximumf %171, %172 : vector<8x78xf32>
    %174 = arith.truncf %173 : vector<8x78xf32> to vector<8x78xbf16>
    %cst_53 = arith.constant dense<0.000000e+00> : vector<8x324xf32>
    %175 = tpu.matmul %174, %3, %cst_53 {dimension_numbers = #tpu.dot_dimension_numbers<[1], [0], [0], [1], [0, 0, 1, 1], [], []>} : vector<8x78xbf16>, vector<78x324xbf16>, vector<8x324xf32> -> vector<8x324xf32>
    %176 = vector.extract_strided_slice %175 {offsets = [0, 0], sizes = [8, 286], strides = [1, 1]} : vector<8x324xf32> to vector<8x286xf32>
    %177 = vector.extract_strided_slice %175 {offsets = [0, 1], sizes = [8, 286], strides = [1, 1]} : vector<8x324xf32> to vector<8x286xf32>
    %178 = vector.extract_strided_slice %175 {offsets = [0, 2], sizes = [8, 286], strides = [1, 1]} : vector<8x324xf32> to vector<8x286xf32>
    %179 = vector.extract_strided_slice %175 {offsets = [0, 18], sizes = [8, 286], strides = [1, 1]} : vector<8x324xf32> to vector<8x286xf32>
    %180 = vector.extract_strided_slice %175 {offsets = [0, 19], sizes = [8, 286], strides = [1, 1]} : vector<8x324xf32> to vector<8x286xf32>
    %181 = vector.extract_strided_slice %175 {offsets = [0, 20], sizes = [8, 286], strides = [1, 1]} : vector<8x324xf32> to vector<8x286xf32>
    %182 = vector.extract_strided_slice %175 {offsets = [0, 36], sizes = [8, 286], strides = [1, 1]} : vector<8x324xf32> to vector<8x286xf32>
    %183 = vector.extract_strided_slice %175 {offsets = [0, 37], sizes = [8, 286], strides = [1, 1]} : vector<8x324xf32> to vector<8x286xf32>
    %184 = vector.extract_strided_slice %175 {offsets = [0, 38], sizes = [8, 286], strides = [1, 1]} : vector<8x324xf32> to vector<8x286xf32>
    %185 = tpu.concatenate %176, %177, %178, %179, %180, %181, %182, %183, %184, %13 in 0 : vector<8x286xf32>, vector<8x286xf32>, vector<8x286xf32>, vector<8x286xf32>, vector<8x286xf32>, vector<8x286xf32>, vector<8x286xf32>, vector<8x286xf32>, vector<8x286xf32>, vector<8x286xf32> -> vector<80x286xf32>
    %186 = arith.truncf %185 : vector<80x286xf32> to vector<80x286xbf16>
    %cst_54 = arith.constant dense<0.000000e+00> : vector<8x286xf32>
    %187 = tpu.matmul %12, %186, %cst_54 {dimension_numbers = #tpu.dot_dimension_numbers<[1], [0], [0], [1], [0, 0, 1, 1], [], []>} : vector<8x80xbf16>, vector<80x286xbf16>, vector<8x286xf32> -> vector<8x286xf32>
    %188 = math.absf %187 : vector<8x286xf32>
    %cst_55 = arith.constant 0.000000e+00 : f32
    %189 = vector.broadcast %cst_55 : f32 to vector<8x286xf32>
    %190 = arith.subf %189, %188 : vector<8x286xf32>
    %191 = math.exp %190 : vector<8x286xf32>
    %cst_56 = arith.constant 1.000000e+00 : f32
    %192 = vector.broadcast %cst_56 : f32 to vector<8x286xf32>
    %193 = arith.addf %192, %191 : vector<8x286xf32>
    %cst_57 = arith.constant 1.000000e+00 : f32
    %194 = vector.broadcast %cst_57 : f32 to vector<8x286xf32>
    %195 = arith.divf %194, %193 : vector<8x286xf32>
    %cst_58 = arith.constant 0.000000e+00 : f32
    %196 = vector.broadcast %cst_58 : f32 to vector<8x286xf32>
    %197 = arith.cmpf oge, %187, %196 : vector<8x286xf32>
    %198 = arith.mulf %191, %195 : vector<8x286xf32>
    %199 = arith.select %197, %195, %198 : vector<8x286xi1>, vector<8x286xf32>
    %200 = arith.truncf %199 : vector<8x286xf32> to vector<8x286xbf16>
    %cst_59 = arith.constant dense<0.000000e+00> : vector<8x256xf32>
    %201 = tpu.matmul %200, %4, %cst_59 {dimension_numbers = #tpu.dot_dimension_numbers<[1], [0], [0], [1], [0, 0, 1, 1], [], []>} : vector<8x286xbf16>, vector<286x256xbf16>, vector<8x256xf32> -> vector<8x256xf32>
    %c1_60 = arith.constant 1 : index
    %c0_61 = arith.constant 0 : index
    %c0_62 = arith.constant 0 : index
    %202 = vector.load %arg9[%c1_60, %c0_61, %c0_62] : memref<2x8x256xf32, #tpu.memory_space<vmem>>, vector<1x8x256xf32>
    %203 = vector.shape_cast %202 : vector<1x8x256xf32> to vector<8x256xf32>
    %204 = vector.shape_cast %201 : vector<8x256xf32> to vector<1x8x256xf32>
    tpu.vector_store %arg9[%c1_60, %c0_61, %c0_62], %204 {strides = array<i32>} : memref<2x8x256xf32, #tpu.memory_space<vmem>>, vector<1x8x256xf32>,
    %205 = tpu.concatenate %62, %157 in 1 : vector<8x16xf32>, vector<8x16xf32> -> vector<8x32xf32>
    %c0_63 = arith.constant 0 : index
    %c0_64 = arith.constant 0 : index
    %c0_65 = arith.constant 0 : index
    %206 = vector.load %arg8[%c0_63, %c0_64, %c0_65] : memref<1x8x32xf32, #tpu.memory_space<vmem>>, vector<1x8x32xf32>
    %207 = vector.shape_cast %206 : vector<1x8x32xf32> to vector<8x32xf32>
    %208 = vector.shape_cast %205 : vector<8x32xf32> to vector<1x8x32xf32>
    tpu.vector_store %arg8[%c0_63, %c0_64, %c0_65], %208 {strides = array<i32>} : memref<1x8x32xf32, #tpu.memory_space<vmem>>, vector<1x8x32xf32>,
    return
  }
  func.func @transform_0(%arg0: i32) -> (i32, i32, i32) {
    %c0_i32 = arith.constant 0 : i32
    %c0_i32_0 = arith.constant 0 : i32
    %c0_i32_1 = arith.constant 0 : i32
    return %arg0, %c0_i32, %c0_i32_0 : i32, i32, i32
  }
  func.func @transform_1(%arg0: i32) -> (i32, i32, i32) {
    %c0_i32 = arith.constant 0 : i32
    %c0_i32_0 = arith.constant 0 : i32
    %c0_i32_1 = arith.constant 0 : i32
    %c0_i32_2 = arith.constant 0 : i32
    return %c0_i32, %c0_i32_0, %c0_i32_1 : i32, i32, i32
  }
  func.func @transform_2(%arg0: i32) -> (i32, i32) {
    %c0_i32 = arith.constant 0 : i32
    %c0_i32_0 = arith.constant 0 : i32
    %c0_i32_1 = arith.constant 0 : i32
    return %c0_i32, %c0_i32_0 : i32, i32
  }
  func.func @transform_3(%arg0: i32) -> (i32, i32) {
    %c0_i32 = arith.constant 0 : i32
    %c0_i32_0 = arith.constant 0 : i32
    %c0_i32_1 = arith.constant 0 : i32
    return %c0_i32, %c0_i32_0 : i32, i32
  }
  func.func @transform_4(%arg0: i32) -> (i32, i32) {
    %c0_i32 = arith.constant 0 : i32
    %c0_i32_0 = arith.constant 0 : i32
    %c0_i32_1 = arith.constant 0 : i32
    return %c0_i32, %c0_i32_0 : i32, i32
  }
  func.func @transform_5(%arg0: i32) -> (i32, i32) {
    %c0_i32 = arith.constant 0 : i32
    %c0_i32_0 = arith.constant 0 : i32
    %c0_i32_1 = arith.constant 0 : i32
    return %c0_i32, %c0_i32_0 : i32, i32
  }
  func.func @transform_6(%arg0: i32) -> (i32, i32) {
    %c0_i32 = arith.constant 0 : i32
    %c0_i32_0 = arith.constant 0 : i32
    %c0_i32_1 = arith.constant 0 : i32
    return %c0_i32, %c0_i32_0 : i32, i32
  }
  func.func @transform_7(%arg0: i32) -> (i32, i32, i32) {
    %c0_i32 = arith.constant 0 : i32
    %c0_i32_0 = arith.constant 0 : i32
    %c0_i32_1 = arith.constant 0 : i32
    return %arg0, %c0_i32, %c0_i32_0 : i32, i32, i32
  }
  func.func @transform_8(%arg0: i32) -> (i32, i32, i32) {
    %c0_i32 = arith.constant 0 : i32
    %c0_i32_0 = arith.constant 0 : i32
    %c0_i32_1 = arith.constant 0 : i32
    return %arg0, %c0_i32, %c0_i32_0 : i32, i32, i32
  }
}

</mosaic_0001>

<bundles_post_ra>
// kernel: semantic_ae_forward.1
= control target key start
LH: loop header
LB: loop body
LE: loop exit
PB: predicated region body
PF: predicated region fallthrough
CT: control target
= control target key end

     0   :  { %s3746_s27 = smov 0   ;;  %s4950_s0 = inlined_call_operand.vmem [shape: f32[4,8,324], index: 0, kind: input, shape index: {}]   ;;  %s4951_s1 = inlined_call_operand.vmem [shape: bf16[4,8,80], index: 1, kind: input, shape index: {}]   ;;  %s4952_s2 = inlined_call_operand.vmem [shape: bf16[267,100], index: 2, kind: input, shape index: {}]   ;;  %s4953_s3 = inlined_call_operand.vmem [shape: bf16[67,16], index: 3, kind: input, shape index: {}]   ;;  %s4954_s4 = inlined_call_operand.vmem [shape: bf16[16,100], index: 4, kind: input, shape index: {}]   ;;  %s4955_s5 = inlined_call_operand.vmem [shape: bf16[78,324], index: 5, kind: input, shape index: {}]   ;;  %s4956_s6 = inlined_call_operand.vmem [shape: bf16[286,256], index: 6, kind: input, shape index: {}]   ;;  %s4957_s7 = inlined_call_operand.vmem [shape: f32[2,8,32], index: 7, kind: output, shape index: {0}]   ;;  %s4958_s8 = inlined_call_operand.vmem [shape: f32[4,8,256], index: 8, kind: output, shape index: {1}]  }
   0x1 LB: > { %s3752_s28 = sadd.s32 4294967295, %s3680_s27   ;;  %p2871_p0 = scmp.ge.s32.totalorder %s3680_s27, 1  ;;  %s3680_s27 = sphi %s3746_s27, %s19_s27  }
   0x2   : > { %p267_p1 = scmp.lt.s32.totalorder %s3680_s27, 3 }
   0x4   : > { %p268_p2 = pnand %p2871_p0, %p267_p1 }
   0x6   : > { %271 = sbr.rel (%p268_p2) target bundleno = 5435 (0x153b), region = 48 }
   0xb   : > { %s2872_s29 = sshll.u32 %s3752_s28, 1  ;;  %s5007_s12 = smov 92   ;;  %v4969_v4 = vmov 0   ;;  %vm530_vm0 = vcmask 736256   ;;  %vm506_vm1 = vcmask 752640   ;;  %v4981_v14 = vmov 1.0  }
   0xc   : > { %p308_p3 = scmp.lt.s32.totalorder %s2872_s29, 3  ;;  %s5005_s13 = smov 90   ;;  %587 = vmatprep.mubr.bf16.mxu1 %v4969_v4  ;;  %vm518_vm2 = vcmask 744448   ;;  %vm494_vm3 = vcmask 883712   ;;  %vm482_vm4 = vcmask 891904   ;;  %vm470_vm5 = vcmask 900096  }
   0xd   : > { %s5001_s14 = smov 91   ;;  %s3685_s15 = smov 108   ;;  %vm4998_vm6 = vcmask 1031168   ;;  %vm446_vm7 = vcmask 1039360   ;;  %vm551_vm8 = vcmask 654336   ;;  %vm3693_vm9 = vmmov 0  }
   0xe   : > { %s5070_s29 = smov (!%p308_p3, %s2872_s29), 3  ;;  %s5003_s16 = smov 109   ;;  %vm781_vm10 = vcmask 1044480   ;;  %vm782_vm11 = vcmask 1045504   ;;  %vm777_vm12 = vcmask 89088   ;;  %vm984_vm13 = vcmask 1040384  }
   0xf   : > { %s3307_s30 = smul.u32 24, %s5070_s29  ;;  %s4959_s17 = smov 110   ;;  %vm985_vm14 = vcmask 1041408   ;;  %vm980_vm15 = vcmask 547840  }
  0x10   : > { %s3688_s18 = smov 126   ;;  %s3690_s19 = smov 127  }
  0x11   : > { %s3763_s11 = scalar_lea.vmem %s4950_s0, %s3307_s30  ;;  %s3695_s26 = smov 106  }
  0x12   : > { %v3766_v0 = vld [vmem:[%s3763_s11 + $0x8] sm:$0xff]  ;;  %v3769_v1 = vld [vmem:[%s3763_s11 + $0x10] sm:$0xff]  ;;  %v3774_v3 = vld [vmem:[%s3763_s11] sm:$0xff]  ;;  %s4967_s30 = smov 117   ;;  %s4963_s9 = smov 107  }
  0x13   : > { %v3340_v2 = vpack.i.bf16 %v3769_v1, %v3766_v0  ;;  %s4961_s10 = smov 116   ;;  %s4965_s20 = smov 118  }
  0x14   : > { %s5009_s25 = smov 110   ;;  %s5044_s22 = smov 107  }
  0x15   : > { %3341 = vrot.lane.b32.xlu1 %v3340_v2, %s5007_s12  ;;  %3336 = vrot.lane.b32.xlu0 %v3340_v2, %s5005_s13  ;;  %s5045_s23 = smov 116   ;;  %p314_p4 = scmp.lt.s32.totalorder %s3752_s28, 1 }
  0x17   : > { %s5072_s28 = smov (!%p314_p4, %s3752_s28), 1 }
  0x19   : > { %3346 = vrot.lane.b32.xlu1 %v3340_v2, %s5001_s14  ;;  %524 = vrot.lane.b32.xlu0 %v3774_v3, %s5005_s13 }
  0x1d   : > { %512 = vrot.lane.b32.xlu1 %v3774_v3, %s5001_s14  ;;  %500 = vrot.lane.b32.xlu0 %v3774_v3, %s5007_s12 }
  0x21   : > { %3356 = vrot.lane.b32.xlu1 %v3340_v2, %s3685_s15  ;;  %3351 = vrot.lane.b32.xlu0 %v3340_v2, %s5003_s16 }
  0x25   : > { %488 = vrot.lane.b32.xlu1 %v3774_v3, %s3685_s15  ;;  %476 = vrot.lane.b32.xlu0 %v3774_v3, %s5003_s16 }
  0x29   : > { %3366 = vrot.lane.b32.xlu1 %v3340_v2, %s4959_s17  ;;  %3361 = vrot.lane.b32.xlu0 %v3340_v2, %s3688_s18 }
  0x2d   : > { %464 = vrot.lane.b32.xlu1 %v3774_v3, %s4959_s17  ;;  %452 = vrot.lane.b32.xlu0 %v3774_v3, %s3688_s18 }
  0x31   : > { %3371 = vrot.lane.b32.xlu0 %v3340_v2, %s3690_s19  ;;  %440 = vrot.lane.b32.xlu1 %v3774_v3, %s3690_s19  ;;  %v427_v2 = vld [vmem:[%s4951_s1] sm:$0xf] }
  0x87   : > { %v3801_v5 = vpop.permute.xlu1 %3341  ;;  %v3803_v6 = vpop.permute.xlu0 %3336 }
  0x88   : > { %v3344_v7 = vunpack.i.h.bf16 %v3801_v5  ;;  %v3343_v8 = vunpack.i.l.bf16 %v3801_v5  ;;  %v3339_v9 = vunpack.i.h.bf16 %v3803_v6  ;;  %v3338_v10 = vunpack.i.l.bf16 %v3803_v6 }
  0x8a   : > { %v532_v11 = vsel %vm530_vm0, %v3338_v10, %v3339_v9  ;;  %v508_v19 = vsel %vm506_vm1, %v3343_v8, %v3344_v7 }
  0x8b   : > { %v3812_v12 = vpop.permute.xlu1 %3346  ;;  %v525_v13 = vpop.permute.xlu0 %524  ;;  %v549_v15 = vpack.c.bf16 %v4981_v14, %v532_v11 }
  0x8c   : > { %v3349_v16 = vunpack.i.h.bf16 %v3812_v12  ;;  %v3348_v17 = vunpack.i.l.bf16 %v3812_v12  ;;  %v531_v18 = vsel %vm530_vm0, %v525_v13, %v3338_v10  ;;  %v550_v10 = vpack.c.bf16 %v4981_v14, %v3339_v9  ;;  %v3515_v13 = vld [vmem:[%s4952_s2 + $0x78] sm:$0xff]  }
  0x8d   : > { %561 = vmatprep.subr.bf16.mxu1 %v549_v15  ;;  %v548_v20 = vpack.c.bf16 %v4981_v14, %v531_v18  ;;  %v3516_v15 = vld [vmem:[%s4952_s2 + $0x38] sm:$0xff]   ;;  %2997 = vmatprep.subr.bf16.mxu0 %v3515_v13 }
  0x8e   : > { %v520_v21 = vsel %vm518_vm2, %v3348_v17, %v3349_v16  ;;  %2998 = vmatpush3.bf16.msra.mxu0 %v3516_v15 }
  0x8f   : > { %v513_v22 = vpop.permute.xlu1 %512  ;;  %562 = vmatpush1.bf16.msra.mxu1 %v548_v20  ;;  %v501_v23 = vpop.permute.xlu0 %500  ;;  %v546_v24 = vpack.c.bf16 %v520_v21, %v508_v19  ;;  %v3518_v21 = vld [vmem:[%s4952_s2 + $0x30] sm:$0xff]  }
  0x90   : > { %v519_v25 = vsel %vm518_vm2, %v513_v22, %v3348_v17  ;;  %v507_v26 = vsel %vm506_vm1, %v501_v23, %v3343_v8  ;;  %v4971_v8 = vmov 0.0   ;;  %v3519_v23 = vld [vmem:[%s4952_s2 + $0x68] sm:$0xff]  }
  0x91   : > { %v545_v27 = vpack.c.bf16 %v519_v25, %v507_v26  ;;  %563 = vmatprep.subr.bf16.mxu1 %v546_v24  ;;  %v3520_v26 = vld [vmem:[%s4952_s2 + $0x28] sm:$0xff]  }
  0x93   : > { %v3357_v28 = vpop.permute.xlu1 %3356  ;;  %564 = vmatpush1.bf16.msra.mxu1 %v545_v27  ;;  %v3352_v29 = vpop.permute.xlu0 %3351  ;;  %v3521_v27 = vld [vmem:[%s4952_s2 + $0x60] sm:$0xff]  }
  0x94   : > { %v3359_v30 = vunpack.i.h.bf16 %v3357_v28  ;;  %v3358_v31 = vunpack.i.l.bf16 %v3357_v28  ;;  %v3354_v32 = vunpack.i.h.bf16 %v3352_v29  ;;  %v3353_v33 = vunpack.i.l.bf16 %v3352_v29  ;;  %v3522_v28 = vld [vmem:[%s4952_s2 + $0x20] sm:$0xff]   ;;  %v3523_v29 = vld [vmem:[%s4952_s2 + $0x58] sm:$0xff]  }
  0x96   : > { %v484_v34 = vsel %vm482_vm4, %v3353_v33, %v3354_v32  ;;  %v496_v35 = vsel %vm494_vm3, %v3358_v31, %v3359_v30 }
  0x97   : > { %v489_v36 = vpop.permute.xlu1 %488  ;;  %v477_v37 = vpop.permute.xlu0 %476  ;;  %v543_v38 = vpack.c.bf16 %v496_v35, %v484_v34  ;;  %v3528_v34 = vld [vmem:[%s4952_s2 + $0x8] sm:$0xff]   ;;  %v3529_v35 = vld [vmem:[%s4952_s2 + $0x80] sm:$0x3f]  }
  0x98   : > { %v495_v39 = vsel %vm494_vm3, %v489_v36, %v3358_v31  ;;  %v483_v40 = vsel %vm482_vm4, %v477_v37, %v3353_v33  ;;  %v3525_v31 = vld [vmem:[%s4952_s2 + $0x50] sm:$0xff]   ;;  %v3527_v33 = vld [vmem:[%s4952_s2 + $0x48] sm:$0xff]   ;;  %v3694_v36 = vmov 65535  }
  0x99   : > { %v542_v41 = vpack.c.bf16 %v495_v39, %v483_v40  ;;  %565 = vmatprep.subr.bf16.mxu1 %v543_v38  ;;  %v783_v37 = vsel %vm781_vm10, 4294967295, %v3694_v36  ;;  %v3530_v40 = vld [vmem:[%s4952_s2 + $0x40] sm:$0xff]   ;;  %vm1038_vm10 = vcmask 130048  }
  0x9a   : > { %v784_v38 = vsel %vm782_vm11, %v783_v37, 0  ;;  %v3535_v37 = vld [vmem:[%s4953_s3 + $0x8] sm:$0xff]   ;;  %vm1238_vm11 = vcmask 1046528  }
  0x9b   : > { %v3367_v42 = vpop.permute.xlu1 %3366  ;;  %v3362_v43 = vpop.permute.xlu0 %3361  ;;  %566 = vmatpush1.bf16.msra.mxu1 %v542_v41  ;;  %v3918_v39 = vand.u32 %v3529_v35, %v784_v38  ;;  %v3531_v41 = vld [vmem:[%s4952_s2] sm:$0xff]  }
  0x9c   : > { %v3369_v44 = vunpack.i.h.bf16 %v3367_v42  ;;  %v3368_v45 = vunpack.i.l.bf16 %v3367_v42  ;;  %v3364_v46 = vunpack.i.h.bf16 %v3362_v43  ;;  %v3363_v47 = vunpack.i.l.bf16 %v3362_v43 }
  0x9e   : > { %v460_v48 = vsel %vm4998_vm6, %v3363_v47, %v3364_v46  ;;  %v472_v49 = vsel %vm470_vm5, %v3368_v45, %v3369_v44  ;;  %v541_v6 = vpack.c.bf16 %v3369_v44, %v3364_v46 }
  0x9f   : > { %v465_v50 = vpop.permute.xlu1 %464  ;;  %v453_v51 = vpop.permute.xlu0 %452  ;;  %v540_v52 = vpack.c.bf16 %v472_v49, %v460_v48 }
  0xa0   : > { %v471_v53 = vsel %vm470_vm5, %v465_v50, %v3368_v45  ;;  %v459_v54 = vsel %vm4998_vm6, %v453_v51, %v3363_v47 }
  0xa1   : > { %v539_v55 = vpack.c.bf16 %v471_v53, %v459_v54  ;;  %567 = vmatprep.subr.bf16.mxu1 %v540_v52 }
  0xa3   : > { %v3372_v56 = vpop.permute.xlu0 %3371  ;;  %568 = vmatpush1.bf16.msra.mxu1 %v539_v55  ;;  %v441_v57 = vpop.permute.xlu1 %440 }
  0xa4   : > { %v3374_v58 = vunpack.i.h.bf16 %v3372_v56  ;;  %v3373_v59 = vunpack.i.l.bf16 %v3372_v56 }
  0xa6   : > { %v447_v60 = vsel %vm446_vm7, %v441_v57, %v3373_v59  ;;  %v448_v61 = vsel %vm446_vm7, %v3373_v59, %v3374_v58  ;;  %v538_v9 = vpack.c.bf16 %v3374_v58, %v3769_v1 }
  0xa7   : > { %v536_v62 = vpack.c.bf16 %v447_v60, %v3774_v3  ;;  %v537_v63 = vpack.c.bf16 %v448_v61, %v3766_v0  ;;  %v547_v0 = vpack.c.bf16 %v3349_v16, %v3344_v7  ;;  %v544_v3 = vpack.c.bf16 %v3359_v30, %v3354_v32  ;;  %v3517_v16 = vld [vmem:[%s4952_s2 + $0x70] sm:$0xff]   ;;  %v3524_v30 = vld [vmem:[%s4952_s2 + $0x18] sm:$0xff]  }
  0xa8   : > { %2999 = vmatprep.subr.bf16.mxu0 %v3517_v16  ;;  %v3526_v32 = vld [vmem:[%s4952_s2 + $0x10] sm:$0xff]  }
  0xa9   : > { %569 = vmatprep.subr.bf16.mxu1 %v537_v63  ;;  %3000 = vmatpush3.bf16.msra.mxu0 %v3518_v21 }
  0xaa   : > { %570 = vmatpush1.bf16.msra.mxu1 %v536_v62  ;;  %3001 = vmatprep.subr.bf16.mxu0 %v3519_v23 }
  0xab   : > { %3115 = vmatprep.subr.bf16.mxu1 %v4971_v8 }
  0xad   : > { %2881 = vmatmul.mubr.msk.bf16.vlgmr.msra.gmra.mxu1 %vm551_vm8, %v427_v2  ;;  %3002 = vmatpush3.bf16.msra.mxu0 %v3520_v26  ;;  %v2878_v26 = vld [vmem:[%s4951_s1 + $0x4] sm:$0xf] }
  0xae   : > { %3116 = vmatpush3.bf16.msra.mxu1 %v550_v10  ;;  %3125 = vmatprep.mubr.msk.bf16.mxu1 %vm3693_vm9, %v4971_v8 }
  0xaf   : > { %3117 = vmatprep.subr.bf16.mxu1 %v4971_v8  ;;  %3003 = vmatprep.subr.bf16.mxu0 %v3521_v27  ;;  %v3532_v27 = vld [vmem:[%s4953_s3 + $0x20] ss:$0 sps:$4 sm:$0x33]  }
  0xb1   : > { %3004 = vmatpush3.bf16.msra.mxu0 %v3522_v28  ;;  %v986_v28 = vsel %vm984_vm13, 4294967295, %v3694_v36  ;;  %vm1234_vm13 = vcmask 637952  }
  0xb2   : > { %3118 = vmatpush3.bf16.msra.mxu1 %v547_v0  ;;  %3005 = vmatprep.subr.bf16.mxu0 %v3523_v29  ;;  %v987_v29 = vsel %vm985_vm14, %v986_v28, 0 }
  0xb3   : > { %3119 = vmatprep.subr.bf16.mxu1 %v4971_v8 }
  0xb5   : > { %3006 = vmatpush3.bf16.msra.mxu0 %v3524_v30  ;;  %v3966_v30 = vand.u32 %v3532_v27, %v987_v29 }
  0xb6   : > { %3120 = vmatpush3.bf16.msra.mxu1 %v544_v3  ;;  %3007 = vmatprep.subr.bf16.mxu0 %v3525_v31  ;;  %v3533_v31 = vld [vmem:[%s4953_s3 + $0x18] sm:$0xff]  }
  0xb7   : > { %3121 = vmatprep.subr.bf16.mxu1 %v4971_v8 }
  0xb9   : > { %3008 = vmatpush3.bf16.msra.mxu0 %v3526_v32 }
  0xba   : > { %3122 = vmatpush3.bf16.msra.mxu1 %v541_v6  ;;  %3009 = vmatprep.subr.bf16.mxu0 %v3527_v33 }
  0xbb   : > { %3123 = vmatprep.subr.bf16.mxu1 %v4971_v8 }
  0xbd   : > { %3010 = vmatpush3.bf16.msra.mxu0 %v3528_v34  ;;  %v3534_v34 = vld [vmem:[%s4953_s3 + $0x10] sm:$0xff]  }
  0xbe   : > { %3124 = vmatpush3.bf16.msra.mxu1 %v538_v9  ;;  %3011 = vmatprep.subr.bf16.mxu0 %v3530_v40  ;;  %v3536_v40 = vld [vmem:[%s4953_s3] sm:$0xff]  }
  0xbf   : > { %3129 = vmatprep.subr.bf16.mxu1 %v4971_v8 }
  0xc1   : > { %3126 = vmatmul.mubr.msk.bf16.vlgmr.msra.gmra.mxu1 %vm551_vm8, %v427_v2  ;;  %3012 = vmatpush3.bf16.msra.mxu0 %v3531_v41  ;;  %v3537_v41 = vld [vmem:[%s4954_s4] sm:$0xff]  }
  0xc2   : > { %3131 = vmatprep.mubr.msk.bf16.mxu1 %vm3693_vm9, %v4971_v8  ;;  %3130 = vmatpush3.bf16.msra.mxu1 %v3918_v39 }
  0xc3   : > { %3135 = vmatprep.subr.bf16.mxu1 %v4971_v8  ;;  %3163 = vmatprep.subr.bf16.mxu0 %v4971_v8 }
 0x16d   : > { %v3862_v5 = vpop.f32.mrf.mxu1 }
 0x16e   : > { %v636_v7 = vmax.f32 %v3862_v5, 0.0 }
 0x16f   : > { %v3865_v11 = vpop.f32.mrf.mxu1 }
 0x170   : > { %642 = vrot.lane.b32.xlu1 %v636_v7, %s3690_s19  ;;  %v637_v18 = vmax.f32 %v3865_v11, 0.0 }
 0x171   : > { %v593_v12 = vpop.f32.mrf.mxu1 }
 0x173   : > { %v594_v1 = vpop.f32.mrf.mxu1 }
 0x181   : > { %v630_v17 = vpop.f32.mrf.mxu1 }
 0x182   : > { %v638_v19 = vmax.f32 %v630_v17, 0.0 }
 0x183   : > { %v3127_v20 = vpop.f32.mrf.mxu1 }
 0x184   : > { %v3375_v22 = vpack.i.bf16 %v638_v19, %v637_v18 }
 0x185   : > { %v633_v24 = vpop.f32.mrf.mxu1 }
 0x186   : > { %3376 = vrot.lane.b32.xlu0 %v3375_v22, %s3690_s19 }
 0x187   : > { %v3128_v25 = vpop.f32.mrf.mxu1 }
 0x1e2   : > { %v643_v45 = vpop.permute.xlu1 %642 }
 0x1f8   : > { %v3377_v42 = vpop.permute.xlu0 %3376 }
 0x1f9   : > { %v3379_v43 = vunpack.i.h.bf16 %v3377_v42  ;;  %v3378_v44 = vunpack.i.l.bf16 %v3377_v42 }
 0x1fb   : > { %v655_v46 = vmax.f32 %v638_v19, %v3379_v43  ;;  %v649_v47 = vsel %vm446_vm7, %v3378_v44, %v3379_v43  ;;  %v648_v48 = vsel %vm446_vm7, %v643_v45, %v3378_v44 }
 0x1fc   : > { %v653_v49 = vmax.f32 %v636_v7, %v648_v48  ;;  %v654_v50 = vmax.f32 %v637_v18, %v649_v47 }
 0x1fe   : > { %659 = vrot.lane.b32.xlu1 %v653_v49, %s4959_s17  ;;  %v3380_v51 = vpack.i.bf16 %v655_v46, %v654_v50 }
 0x200   : > { %3381 = vrot.lane.b32.xlu0 %v3380_v51, %s4959_s17  ;;  %s2990_s17 = sshll.u32 %s5070_s29, 4  ;;  %s5043_s29 = smov 117  }
 0x201   : > { %s4694_s21 = scalar_lea.vmem %s4958_s8, %s2990_s17  ;;  %s3700_s17 = smov 16  }
 0x270   : > { %v660_v55 = vpop.permute.xlu1 %659 }
 0x272   : > { %v3382_v52 = vpop.permute.xlu0 %3381 }
 0x273   : > { %v3384_v53 = vunpack.i.h.bf16 %v3382_v52  ;;  %v3383_v54 = vunpack.i.l.bf16 %v3382_v52 }
 0x275   : > { %v672_v56 = vmax.f32 %v655_v46, %v3384_v53  ;;  %v666_v57 = vsel %vm470_vm5, %v3383_v54, %v3384_v53  ;;  %v665_v58 = vsel %vm470_vm5, %v660_v55, %v3383_v54 }
 0x276   : > { %v671_v59 = vmax.f32 %v654_v50, %v666_v57  ;;  %v670_v60 = vmax.f32 %v653_v49, %v665_v58  ;;  %v3540_v57 = vld [vmem:[%s4955_s5 + $0x60] ss:$12 sps:$4 sm:$0x7f]  }
 0x277   : > { %v675_v61 = vpack.c.bf16 %v672_v56, %v672_v56  ;;  %v3538_v56 = vld [vmem:[%s4955_s5 + $0x64] ss:$12 sps:$4 sm:$0x7f]   ;;  %v3544_v58 = vld [vmem:[%s4955_s5 + $0x4c] ss:$12 sps:$4 sm:$0xff]  }
 0x278   : > { %v674_v62 = vpack.c.bf16 %v671_v59, %v671_v59  ;;  %v673_v63 = vpack.c.bf16 %v670_v60, %v670_v60  ;;  %v4017_v59 = vsel %vm1238_vm11, %v3540_v57, 0  ;;  %v3542_v60 = vld [vmem:[%s4955_s5 + $0x48] ss:$12 sps:$4 sm:$0xff]  }
 0x279   : > { %3132 = vmatmul.mubr.msk.bf16.vlgmr.msra.gmra.mxu1 %vm777_vm12, %v675_v61  ;;  %v3548_v61 = vld [vmem:[%s4955_s5 + $0x34] ss:$12 sps:$4 sm:$0xff]  }
 0x27a   : > { %820 = vmatprep.mubr.bf16.mxu0 %v674_v62  ;;  %3145 = vmatprep.mubr.msk.bf16.mxu1 %vm3693_vm9, %v4971_v8  ;;  %v3546_v62 = vld [vmem:[%s4955_s5 + $0x30] ss:$12 sps:$4 sm:$0xff]  }
 0x27b   : > { %821 = vmatmul.mubr.bf16.vlgmr.msra.gmra.mxu0 %v673_v63  ;;  %v3552_v63 = vld [vmem:[%s4955_s5 + $0x1c] ss:$12 sps:$4 sm:$0xff]  }
 0x27c   : > { %3165 = vmatprep.mubr.msk.bf16.mxu0 %vm3693_vm9, %v4971_v8  ;;  %3164 = vmatpush3.bf16.msra.mxu0 %v3537_v41 }
 0x27d   : > { %3169 = vmatprep.subr.bf16.mxu0 %v4971_v8 }
 0x339   : > { %v862_v2 = vpop.f32.mrf.mxu1 }
 0x33b   : > { %v3013_v10 = vpop.f32.mrf.mxu0  ;;  %v3133_v0 = vpop.f32.mrf.mxu1 }
 0x33d   : > { %v3014_v3 = vpop.f32.mrf.mxu0  ;;  %v865_v6 = vpop.f32.mrf.mxu1 }
 0x33e   : > { %v3015_v9 = vadd.f32 %v3014_v3, %v3013_v10 }
 0x33f   : > { %v3016_v5 = vpop.f32.mrf.mxu0  ;;  %v3134_v7 = vpop.f32.mrf.mxu1 }
 0x340   : > { %v863_v11 = vadd.f32 %v3015_v9, %v862_v2  ;;  %v3550_v2 = vld [vmem:[%s4955_s5 + $0x18] ss:$12 sps:$4 sm:$0xff]  }
 0x341   : > { %v3017_v12 = vpop.f32.mrf.mxu0 }
 0x342   : > { %884 = vrot.lane.b32.xlu1 %v863_v11, %s3685_s15  ;;  %890 = vrot.lane.b32.xlu0 %v863_v11, %s3695_s26 }
 0x346   : > { %878 = vrot.lane.b32.xlu1 %v863_v11, %s4967_s30  ;;  %887 = vrot.lane.b32.xlu0 %v863_v11, %s4963_s9 }
 0x34a   : > { %872 = vrot.lane.b32.xlu1 %v863_v11, %s3688_s18  ;;  %881 = vrot.lane.b32.xlu0 %v863_v11, %s4961_s10 }
 0x34e   : > { %869 = vrot.lane.b32.xlu1 %v863_v11, %s3690_s19  ;;  %875 = vrot.lane.b32.xlu0 %v863_v11, %s4965_s20 }
 0x3b4   : > { %v885_v1 = vpop.permute.xlu1 %884  ;;  %v891_v13 = vpop.permute.xlu0 %890 }
 0x3b5   : > { %v897_v15 = vpack.c.bf16 %v4981_v14, %v891_v13 }
 0x3b7   : > { %3136 = vmatpush3.bf16.msra.mxu1 %v897_v15 }
 0x3b8   : > { %v879_v16 = vpop.permute.xlu1 %878  ;;  %v888_v17 = vpop.permute.xlu0 %887  ;;  %3137 = vmatprep.subr.bf16.mxu1 %v4971_v8 }
 0x3b9   : > { %v896_v18 = vpack.c.bf16 %v888_v17, %v885_v1 }
 0x3bb   : > { %3138 = vmatpush3.bf16.msra.mxu1 %v896_v18  ;;  %v2879_v18 = vld [vmem:[%s4951_s1 + $0x8] sm:$0xf] }
 0x3bc   : > { %v873_v19 = vpop.permute.xlu1 %872  ;;  %v882_v20 = vpop.permute.xlu0 %881  ;;  %3139 = vmatprep.subr.bf16.mxu1 %v4971_v8 }
 0x3bd   : > { %v895_v21 = vpack.c.bf16 %v882_v20, %v879_v16  ;;  %v3541_v16 = vld [vmem:[%s4955_s5 + $0x68] ss:$12 sps:$4 sm:$0x7f]   ;;  %v3545_v20 = vld [vmem:[%s4955_s5 + $0x50] ss:$12 sps:$4 sm:$0xff]  }
 0x3bf   : > { %3140 = vmatpush3.bf16.msra.mxu1 %v895_v21  ;;  %v3549_v21 = vld [vmem:[%s4955_s5 + $0x38] ss:$12 sps:$4 sm:$0xff]  }
 0x3c0   : > { %v876_v22 = vpop.permute.xlu0 %875  ;;  %3141 = vmatprep.subr.bf16.mxu1 %v4971_v8  ;;  %v870_v24 = vpop.permute.xlu1 %869 }
 0x3c1   : > { %v894_v23 = vpack.c.bf16 %v876_v22, %v873_v19  ;;  %v893_v25 = vpack.c.bf16 %v870_v24, %v863_v11  ;;  %v4050_v19 = vsel %vm1238_vm11, %v3541_v16, 0  ;;  %v3553_v22 = vld [vmem:[%s4955_s5 + $0x20] ss:$12 sps:$4 sm:$0xff]  }
 0x3c2   : > { %v3554_v24 = vld [vmem:[%s4955_s5] ss:$12 sps:$4 sm:$0xff]  }
 0x3c3   : > { %3142 = vmatpush3.bf16.msra.mxu1 %v894_v23  ;;  %v3556_v23 = vld [vmem:[%s4955_s5 + $0x4] ss:$12 sps:$4 sm:$0xff]  }
 0x3c4   : > { %3143 = vmatprep.subr.bf16.mxu1 %v4971_v8 }
 0x3c7   : > { %3144 = vmatpush3.bf16.msra.mxu1 %v893_v25  ;;  %v3557_v25 = vld [vmem:[%s4955_s5 + $0x8] ss:$12 sps:$4 sm:$0xff]  }
 0x3c8   : > { %3149 = vmatprep.subr.bf16.mxu1 %v4971_v8 }
 0x3ca   : > { %3146 = vmatmul.mubr.msk.bf16.vlgmr.msra.gmra.mxu1 %vm551_vm8, %v2878_v26 }
 0x3cb   : > { %3159 = vmatprep.mubr.msk.bf16.mxu1 %vm3693_vm9, %v4971_v8  ;;  %3150 = vmatpush3.bf16.msra.mxu1 %v3966_v30 }
 0x3cc   : > { %3151 = vmatprep.subr.bf16.mxu1 %v4971_v8 }
 0x3cf   : > { %3152 = vmatpush3.bf16.msra.mxu1 %v3533_v31 }
 0x3d0   : > { %3153 = vmatprep.subr.bf16.mxu1 %v4971_v8 }
 0x3d3   : > { %3154 = vmatpush3.bf16.msra.mxu1 %v3534_v34 }
 0x3d4   : > { %3155 = vmatprep.subr.bf16.mxu1 %v4971_v8 }
 0x3d7   : > { %3156 = vmatpush3.bf16.msra.mxu1 %v3535_v37 }
 0x3d8   : > { %3157 = vmatprep.subr.bf16.mxu1 %v4971_v8 }
 0x3db   : > { %3158 = vmatpush3.bf16.msra.mxu1 %v3536_v40 }
 0x3dc   : > { %2926 = vmatprep.subr.msk.bf16.mxu1 %vm1238_vm11, %v3538_v56 }
 0x48a   : > { %v935_v32 = vpop.f32.mrf.mxu1 }
 0x48b   : > { %v941_v33 = vmax.f32 %v935_v32, 0.0 }
 0x48c   : > { %v3147_v35 = vpop.f32.mrf.mxu1 }
 0x48d   : > { %943 = vrot.lane.b32.xlu0 %v941_v33, %s3690_s19 }
 0x48e   : > { %v938_v36 = vpop.f32.mrf.mxu1 }
 0x490   : > { %v3148_v38 = vpop.f32.mrf.mxu1 }
 0x4ff   : > { %v944_v42 = vpop.permute.xlu0 %943 }
 0x500   : > { %v946_v43 = vmax.f32 %v941_v33, %v944_v42  ;;  %v4103_v42 = vld [vmem:[%s3763_s11 + $0x20] sm:$0xff] }
 0x502   : > { %948 = vrot.lane.b32.xlu1 %v946_v43, %s4965_s20 }
 0x574   : > { %v949_v44 = vpop.permute.xlu1 %948 }
 0x575   : > { %v951_v45 = vmax.f32 %v946_v43, %v949_v44  ;;  %v4106_v43 = vld [vmem:[%s3763_s11 + $0x28] sm:$0xff] }
 0x576   : > { %v3385_v44 = vpack.i.bf16 %v4106_v43, %v4103_v42 }
 0x577   : > { %v952_v46 = vpack.c.bf16 %v951_v45, %v951_v45  ;;  %v4115_v45 = vld [vmem:[%s3763_s11 + $0x18] sm:$0xff]  ;;  %s5047_s11 = smov 92  }
 0x579   : > { %3160 = vmatmul.mubr.msk.bf16.vlgmr.msra.gmra.mxu1 %vm980_vm15, %v952_v46 }
 0x57a   : > { %1280 = vmatprep.mubr.bf16.mxu1 %v4969_v4  ;;  %1255 = vmatpush1.bf16.msra.mxu1 %v4017_v59 }
 0x57b   : > { %1256 = vmatprep.subr.bf16.mxu1 %v3544_v58 }
 0x57e   : > { %1257 = vmatpush1.bf16.msra.mxu1 %v3542_v60 }
 0x57f   : > { %1258 = vmatprep.subr.bf16.mxu1 %v3548_v61 }
 0x582   : > { %1259 = vmatpush1.bf16.msra.mxu1 %v3546_v62 }
 0x583   : > { %1260 = vmatprep.subr.bf16.mxu1 %v3552_v63 }
 0x586   : > { %1261 = vmatpush1.bf16.msra.mxu1 %v3550_v2  ;;  %v4188_v2 = vld [vmem:[%s4951_s1 + $0xc] sm:$0xf] }
 0x587   : > { %1262 = vmatprep.subr.bf16.mxu1 %v3556_v23 }
 0x58a   : > { %1263 = vmatpush1.bf16.msra.mxu1 %v3554_v24 }
 0x639   : > { %v3993_v47 = vpop.f32.mrf.mxu1 }
 0x63a   : > { %v1031_v48 = vpack.c.bf16 %v3993_v47, %v3993_v47 }
 0x63b   : > { %v3161_v49 = vpop.f32.mrf.mxu1 }
 0x63c   : > { %3166 = vmatmul.mubr.msk.bf16.vlgmr.msra.gmra.mxu0 %vm1038_vm10, %v1031_v48 }
 0x63d   : > { %v1028_v50 = vpop.f32.mrf.mxu1  ;;  %3179 = vmatprep.mubr.msk.bf16.mxu0 %vm3693_vm9, %v4971_v8 }
 0x63f   : > { %v3162_v51 = vpop.f32.mrf.mxu1 }
 0x6fc   : > { %v1076_v52 = vpop.f32.mrf.mxu0 }
 0x6fd   : > { %1098 = vrot.lane.b32.xlu1 %v1076_v52, %s3685_s15  ;;  %1104 = vrot.lane.b32.xlu0 %v1076_v52, %s3695_s26 }
 0x6fe   : > { %v3167_v53 = vpop.f32.mrf.mxu0 }
 0x700   : > { %v1079_v54 = vpop.f32.mrf.mxu0 }
 0x701   : > { %1092 = vrot.lane.b32.xlu1 %v1076_v52, %s4967_s30  ;;  %1101 = vrot.lane.b32.xlu0 %v1076_v52, %s4963_s9  ;;  %s5046_s30 = smov 118   ;;  %s5048_s9 = smov 90  }
 0x702   : > { %v3168_v55 = vpop.f32.mrf.mxu0 }
 0x705   : > { %1086 = vrot.lane.b32.xlu1 %v1076_v52, %s3688_s18  ;;  %1095 = vrot.lane.b32.xlu0 %v1076_v52, %s4961_s10  ;;  %s5049_s10 = smov 109  }
 0x709   : > { %1083 = vrot.lane.b32.xlu1 %v1076_v52, %s3690_s19  ;;  %1089 = vrot.lane.b32.xlu0 %v1076_v52, %s4965_s20  ;;  %s5050_s20 = smov 91  }
 0x76f   : > { %v1099_v10 = vpop.permute.xlu1 %1098  ;;  %v1105_v0 = vpop.permute.xlu0 %1104 }
 0x770   : > { %v1111_v3 = vpack.c.bf16 %v4981_v14, %v1105_v0 }
 0x772   : > { %3170 = vmatpush3.bf16.msra.mxu0 %v1111_v3 }
 0x773   : > { %v1093_v6 = vpop.permute.xlu1 %1092  ;;  %v1102_v9 = vpop.permute.xlu0 %1101  ;;  %3171 = vmatprep.subr.bf16.mxu0 %v4971_v8 }
 0x774   : > { %v1110_v5 = vpack.c.bf16 %v1102_v9, %v1099_v10 }
 0x776   : > { %3172 = vmatpush3.bf16.msra.mxu0 %v1110_v5 }
 0x777   : > { %v1087_v7 = vpop.permute.xlu1 %1086  ;;  %v1096_v11 = vpop.permute.xlu0 %1095  ;;  %3173 = vmatprep.subr.bf16.mxu0 %v4971_v8 }
 0x778   : > { %v1109_v12 = vpack.c.bf16 %v1096_v11, %v1093_v6 }
 0x77a   : > { %3174 = vmatpush3.bf16.msra.mxu0 %v1109_v12 }
 0x77b   : > { %v1090_v1 = vpop.permute.xlu0 %1089  ;;  %3175 = vmatprep.subr.bf16.mxu0 %v4971_v8  ;;  %v1084_v15 = vpop.permute.xlu1 %1083 }
 0x77c   : > { %v1108_v13 = vpack.c.bf16 %v1090_v1, %v1087_v7  ;;  %v1107_v17 = vpack.c.bf16 %v1084_v15, %v1076_v52 }
 0x77e   : > { %3176 = vmatpush3.bf16.msra.mxu0 %v1108_v13 }
 0x77f   : > { %3177 = vmatprep.subr.bf16.mxu0 %v4971_v8 }
 0x782   : > { %3178 = vmatpush3.bf16.msra.mxu0 %v1107_v17 }
 0x783   : > { %3183 = vmatprep.subr.bf16.mxu0 %v4971_v8 }
 0x785   : > { %3180 = vmatmul.mubr.msk.bf16.vlgmr.msra.gmra.mxu0 %vm551_vm8, %v2879_v18 }
 0x786   : > { %3184 = vmatpush3.bf16.msra.mxu0 %v4050_v19  ;;  %3193 = vmatprep.mubr.msk.bf16.mxu0 %vm3693_vm9, %v4971_v8 }
 0x787   : > { %3185 = vmatprep.subr.bf16.mxu0 %v4971_v8 }
 0x78a   : > { %3186 = vmatpush3.bf16.msra.mxu0 %v3545_v20 }
 0x78b   : > { %3187 = vmatprep.subr.bf16.mxu0 %v4971_v8 }
 0x78e   : > { %3188 = vmatpush3.bf16.msra.mxu0 %v3549_v21 }
 0x78f   : > { %3189 = vmatprep.subr.bf16.mxu0 %v4971_v8 }
 0x792   : > { %3190 = vmatpush3.bf16.msra.mxu0 %v3553_v22 }
 0x793   : > { %3191 = vmatprep.subr.bf16.mxu0 %v4971_v8 }
 0x796   : > { %3192 = vmatpush3.bf16.msra.mxu0 %v3557_v25 }
 0x797   : > { %3197 = vmatprep.subr.bf16.mxu0 %v4971_v8 }
 0x845   : > { %v1149_v26 = vpop.f32.mrf.mxu0 }
 0x846   : > { %v1155_v27 = vmax.f32 %v1149_v26, 0.0 }
 0x847   : > { %v3181_v28 = vpop.f32.mrf.mxu0 }
 0x848   : > { %v1156_v29 = vpack.c.bf16 %v1155_v27, %v1155_v27 }
 0x849   : > { %v1152_v31 = vpop.f32.mrf.mxu0 }
 0x84a   : > { %2927 = vmatmul.mubr.msk.bf16.vlgmr.msra.gmra.mxu1 %vm1234_vm13, %v1156_v29  ;;  %3194 = vmatmul.mubr.msk.bf16.vlgmr.msra.gmra.mxu0 %vm1234_vm13, %v1156_v29 }
 0x84b   : > { %v3182_v32 = vpop.f32.mrf.mxu0  ;;  %3207 = vmatprep.mubr.msk.bf16.mxu0 %vm3693_vm9, %v4971_v8  ;;  %1470 = vmatprep.mubr.bf16.mxu1 %v4969_v4 }
 0x90a   : > { %v4084_v33 = vpop.f32.mrf.mxu1  ;;  %v4086_v34 = vpop.f32.mrf.mxu0 }
 0x90b   : > { %1391 = vrot.lane.b32.xlu1 %v4086_v34, %s5007_s12  ;;  %1413 = vrot.lane.b32.xlu0 %v4086_v34, %s5005_s13 }
 0x90c   : > { %v4092_v35 = vpop.f32.mrf.mxu1  ;;  %v3195_v36 = vpop.f32.mrf.mxu0 }
 0x90d   : > { %v3430_v46 = vpack.i.bf16 %v4084_v33, %v4092_v35 }
 0x90e   : > { %v1286_v37 = vpop.f32.mrf.mxu1  ;;  %v1326_v38 = vpop.f32.mrf.mxu0 }
 0x90f   : > { %1369 = vrot.lane.b32.xlu1 %v4086_v34, %s5003_s16  ;;  %1402 = vrot.lane.b32.xlu0 %v4086_v34, %s5001_s14 }
 0x910   : > { %v1287_v40 = vpop.f32.mrf.mxu1  ;;  %v3196_v41 = vpop.f32.mrf.mxu0 }
 0x913   : > { %1347 = vrot.lane.b32.xlu1 %v4086_v34, %s3688_s18  ;;  %1380 = vrot.lane.b32.xlu0 %v4086_v34, %s3685_s15 }
 0x917   : > { %1336 = vrot.lane.b32.xlu1 %v4086_v34, %s3690_s19  ;;  %1358 = vrot.lane.b32.xlu0 %v4086_v34, %s5009_s25 }
 0x91b   : > { %1908 = vrot.lane.b32.xlu1 %v4115_v45, %s5005_s13  ;;  %3386 = vrot.lane.b32.xlu0 %v3385_v44, %s5005_s13 }
 0x91f   : > { %3396 = vrot.lane.b32.xlu1 %v3385_v44, %s5001_s14  ;;  %3391 = vrot.lane.b32.xlu0 %v3385_v44, %s5007_s12 }
 0x923   : > { %1897 = vrot.lane.b32.xlu1 %v4115_v45, %s5001_s14  ;;  %1886 = vrot.lane.b32.xlu0 %v4115_v45, %s5007_s12 }
 0x927   : > { %3406 = vrot.lane.b32.xlu1 %v3385_v44, %s3685_s15  ;;  %3401 = vrot.lane.b32.xlu0 %v3385_v44, %s5003_s16 }
 0x92b   : > { %1875 = vrot.lane.b32.xlu1 %v4115_v45, %s3685_s15  ;;  %1864 = vrot.lane.b32.xlu0 %v4115_v45, %s5003_s16 }
 0x92f   : > { %3416 = vrot.lane.b32.xlu1 %v3385_v44, %s5009_s25  ;;  %3411 = vrot.lane.b32.xlu0 %v3385_v44, %s3688_s18 }
 0x933   : > { %1853 = vrot.lane.b32.xlu1 %v4115_v45, %s5009_s25  ;;  %1842 = vrot.lane.b32.xlu0 %v4115_v45, %s3688_s18 }
 0x937   : > { %1831 = vrot.lane.b32.xlu1 %v4115_v45, %s3690_s19  ;;  %3421 = vrot.lane.b32.xlu0 %v3385_v44, %s3690_s19 }
 0x93b   : > { %3431 = vrot.lane.b32.xlu1 %v3430_v46, %s5007_s12  ;;  %3426 = vrot.lane.b32.xlu0 %v3430_v46, %s5005_s13 }
 0x93f   : > { %3441 = vrot.lane.b32.xlu1 %v3430_v46, %s5003_s16  ;;  %3436 = vrot.lane.b32.xlu0 %v3430_v46, %s5001_s14 }
 0x943   : > { %3451 = vrot.lane.b32.xlu1 %v3430_v46, %s3688_s18  ;;  %3446 = vrot.lane.b32.xlu0 %v3430_v46, %s3685_s15 }
 0x947   : > { %3461 = vrot.lane.b32.xlu1 %v3430_v46, %s3690_s19  ;;  %3456 = vrot.lane.b32.xlu0 %v3430_v46, %s5009_s25 }
 0x97d   : > { %v4151_v48 = vpop.permute.xlu1 %1391  ;;  %v4153_v49 = vpop.permute.xlu0 %1413 }
 0x97e   : > { %v1434_v50 = vpack.c.bf16 %v4981_v14, %v4153_v49 }
 0x980   : > { %3198 = vmatpush3.bf16.msra.mxu0 %v1434_v50 }
 0x981   : > { %v4157_v51 = vpop.permute.xlu1 %1369  ;;  %v4159_v52 = vpop.permute.xlu0 %1402  ;;  %3199 = vmatprep.subr.bf16.mxu0 %v4971_v8 }
 0x982   : > { %v1431_v53 = vpack.c.bf16 %v4159_v52, %v4151_v48 }
 0x984   : > { %3200 = vmatpush3.bf16.msra.mxu0 %v1431_v53 }
 0x985   : > { %v4164_v54 = vpop.permute.xlu1 %1347  ;;  %v4166_v55 = vpop.permute.xlu0 %1380  ;;  %3201 = vmatprep.subr.bf16.mxu0 %v4971_v8 }
 0x986   : > { %v1428_v56 = vpack.c.bf16 %v4166_v55, %v4157_v51 }
 0x988   : > { %3202 = vmatpush3.bf16.msra.mxu0 %v1428_v56 }
 0x989   : > { %v4171_v57 = vpop.permute.xlu1 %1336  ;;  %v4173_v58 = vpop.permute.xlu0 %1358  ;;  %3203 = vmatprep.subr.bf16.mxu0 %v4971_v8 }
 0x98a   : > { %v1425_v60 = vpack.c.bf16 %v4173_v58, %v4164_v54  ;;  %v1422_v63 = vpack.c.bf16 %v4171_v57, %v4086_v34 }
 0x98c   : > { %3204 = vmatpush3.bf16.msra.mxu0 %v1425_v60 }
 0x98d   : > { %v4178_v61 = vpop.permute.xlu1 %1908  ;;  %v4180_v62 = vpop.permute.xlu0 %3386  ;;  %3205 = vmatprep.subr.bf16.mxu0 %v4971_v8 }
 0x990   : > { %3206 = vmatpush3.bf16.msra.mxu0 %v1422_v63 }
 0x991   : > { %v4190_v10 = vpop.permute.xlu1 %3396  ;;  %v4192_v0 = vpop.permute.xlu0 %3391 }
 0x992   : > { %v3399_v3 = vunpack.i.h.bf16 %v4190_v10  ;;  %v3398_v6 = vunpack.i.l.bf16 %v4190_v10  ;;  %v3394_v9 = vunpack.i.h.bf16 %v4192_v0  ;;  %v3393_v5 = vunpack.i.l.bf16 %v4192_v0  ;;  %v4367_v0 = vld [vmem:[%s4956_s6 + $0x70] ss:$8 sps:$4 sm:$0xff]   ;;  %v4374_v10 = vld [vmem:[%s4956_s6 + $0x64] ss:$8 sps:$4 sm:$0xff]  }
 0x993   : > { %3208 = vmatmul.mubr.msk.bf16.vlgmr.msra.gmra.mxu0 %vm551_vm8, %v4188_v2 }
 0x994   : > { %v4204_v7 = vpack.c.bf16 %v3399_v3, %v3394_v9  ;;  %1813 = vmatprep.mubr.bf16.mxu0 %v4969_v4 }
 0x995   : > { %v1898_v11 = vpop.permute.xlu1 %1897  ;;  %v1887_v12 = vpop.permute.xlu0 %1886 }
 0x996   : > { %v4210_v1 = vsel %vm518_vm2, %v1898_v11, %v3398_v6  ;;  %v4215_v13 = vsel %vm506_vm1, %v1887_v12, %v3393_v5 }
 0x999   : > { %v4219_v16 = vpop.permute.xlu1 %3406  ;;  %v4221_v17 = vpop.permute.xlu0 %3401 }
 0x99a   : > { %v4979_v18 = vunpack.i.h.bf16 %v4219_v16  ;;  %v4978_v20 = vunpack.i.l.bf16 %v4219_v16  ;;  %v3404_v21 = vunpack.i.h.bf16 %v4221_v17  ;;  %v3403_v22 = vunpack.i.l.bf16 %v4221_v17  ;;  %v4567_v17 = vld [vmem:[%s4956_s6 + $0x90] ss:$8 sps:$4 sm:$0xff]  }
 0x99b   : > { %5028 = vst [vmem:[#allocation14_spill] sm:$0xff] %v4567_v17 }
 0x99c   : > { %v4231_v23 = vpack.c.bf16 %v4979_v18, %v3404_v21 }
 0x99d   : > { %v1876_v24 = vpop.permute.xlu1 %1875  ;;  %v1865_v25 = vpop.permute.xlu0 %1864 }
 0x99e   : > { %v4236_v26 = vsel %vm494_vm3, %v1876_v24, %v4978_v20  ;;  %v4241_v27 = vsel %vm482_vm4, %v1865_v25, %v3403_v22 }
 0x9a1   : > { %v4245_v29 = vpop.permute.xlu1 %3416  ;;  %v4247_v31 = vpop.permute.xlu0 %3411 }
 0x9a2   : > { %v4974_v32 = vunpack.i.h.bf16 %v4245_v29  ;;  %v4973_v34 = vunpack.i.l.bf16 %v4245_v29  ;;  %v4977_v36 = vunpack.i.h.bf16 %v4247_v31  ;;  %v4976_v37 = vunpack.i.l.bf16 %v4247_v31 }
 0x9a4   : > { %v4257_v38 = vpack.c.bf16 %v4974_v32, %v4977_v36 }
 0x9a5   : > { %v1854_v40 = vpop.permute.xlu1 %1853  ;;  %v1843_v41 = vpop.permute.xlu0 %1842 }
 0x9a6   : > { %v4262_v44 = vsel %vm470_vm5, %v1854_v40, %v4973_v34  ;;  %v4267_v46 = vsel %vm4998_vm6, %v1843_v41, %v4976_v37 }
 0x9a9   : > { %v1832_v53 = vpop.permute.xlu1 %1831  ;;  %v4271_v56 = vpop.permute.xlu0 %3421 }
 0x9aa   : > { %v4975_v60 = vunpack.i.l.bf16 %v4271_v56 }
 0x9ac   : > { %v4277_v63 = vsel %vm446_vm7, %v1832_v53, %v4975_v60 }
 0x9ad   : > { %v3432_v11 = vpop.permute.xlu1 %3431  ;;  %v3427_v12 = vpop.permute.xlu0 %3426 }
 0x9ae   : > { %v3429_v24 = vunpack.i.h.bf16 %v3427_v12  ;;  %v3428_v25 = vunpack.i.l.bf16 %v3427_v12  ;;  %v3434_v40 = vunpack.i.h.bf16 %v3432_v11  ;;  %v3433_v41 = vunpack.i.l.bf16 %v3432_v11 }
 0x9b0   : > { %v1415_v28 = vsel %vm530_vm0, %v3429_v24, %v3428_v25  ;;  %v1416_v50 = vsel %vm530_vm0, %v3428_v25, %v4153_v49  ;;  %v1393_v60 = vsel %vm506_vm1, %v3434_v40, %v3433_v41  ;;  %v1394_v12 = vsel %vm506_vm1, %v3433_v41, %v4151_v48 }
 0x9b1   : > { %v1432_v15 = vpack.c.bf16 %v4981_v14, %v1415_v28  ;;  %v3442_v4 = vpop.permute.xlu1 %3441  ;;  %v3437_v8 = vpop.permute.xlu0 %3436  ;;  %v1433_v34 = vpack.c.bf16 %v4981_v14, %v1416_v50 }
 0x9b2   : > { %v3439_v32 = vunpack.i.h.bf16 %v3437_v8  ;;  %v3438_v53 = vunpack.i.l.bf16 %v3437_v8  ;;  %v3444_v11 = vunpack.i.h.bf16 %v3442_v4  ;;  %v3443_v37 = vunpack.i.l.bf16 %v3442_v4 }
 0x9b3   : > { %1444 = vmatprep.subr.bf16.mxu1 %v1433_v34 }
 0x9b4   : > { %v1404_v24 = vsel %vm518_vm2, %v3439_v32, %v3438_v53  ;;  %1445 = vmatpush1.bf16.msra.mxu1 %v1432_v15  ;;  %v1405_v49 = vsel %vm518_vm2, %v3438_v53, %v4159_v52  ;;  %v1371_v34 = vsel %vm482_vm4, %v3444_v11, %v3443_v37  ;;  %v1372_v4 = vsel %vm482_vm4, %v3443_v37, %v4157_v51 }
 0x9b5   : > { %v1429_v28 = vpack.c.bf16 %v1404_v24, %v1393_v60  ;;  %v3452_v25 = vpop.permute.xlu1 %3451  ;;  %v3447_v36 = vpop.permute.xlu0 %3446  ;;  %v1430_v50 = vpack.c.bf16 %v1405_v49, %v1394_v12 }
 0x9b6   : > { %v3449_v20 = vunpack.i.h.bf16 %v3447_v36  ;;  %v3448_v8 = vunpack.i.l.bf16 %v3447_v36  ;;  %v3454_v18 = vunpack.i.h.bf16 %v3452_v25  ;;  %v3453_v40 = vunpack.i.l.bf16 %v3452_v25 }
 0x9b7   : > { %1446 = vmatprep.subr.bf16.mxu1 %v1430_v50 }
 0x9b8   : > { %v1382_v48 = vsel %vm494_vm3, %v3449_v20, %v3448_v8  ;;  %1447 = vmatpush1.bf16.msra.mxu1 %v1429_v28  ;;  %v1383_v52 = vsel %vm494_vm3, %v3448_v8, %v4166_v55  ;;  %v1349_v24 = vsel %vm4998_vm6, %v3454_v18, %v3453_v40  ;;  %v1350_v51 = vsel %vm4998_vm6, %v3453_v40, %v4164_v54  ;;  %v4312_v54 = vld [vmem:[%s4956_s6 + $0x114] ss:$8 sps:$4 sm:$0x7f]   ;;  %v4333_v8 = vld [vmem:[%s4956_s6 + $0x100] ss:$8 sps:$4 sm:$0xff]  }
 0x9b9   : > { %v1426_v15 = vpack.c.bf16 %v1382_v48, %v1371_v34  ;;  %v3462_v32 = vpop.permute.xlu1 %3461  ;;  %v3457_v60 = vpop.permute.xlu0 %3456  ;;  %v1427_v41 = vpack.c.bf16 %v1383_v52, %v1372_v4  ;;  %2967 = vmatprep.subr.msk.bf16.mxu0 %vm1238_vm11, %v4312_v54  ;;  %v4348_v48 = vsel %vm506_vm1, %v3393_v5, %v3394_v9  ;;  %v4355_v4 = vsel %vm518_vm2, %v3398_v6, %v3399_v3  ;;  %v4360_v52 = vld [vmem:[%s4956_s6 + $0x74] ss:$8 sps:$4 sm:$0xff]   ;;  %v4379_v3 = vld [vmem:[%s4956_s6 + $0x60] ss:$8 sps:$4 sm:$0xff]  }
 0x9ba   : > { %v3463_v53 = vunpack.i.l.bf16 %v3462_v32  ;;  %v3459_v36 = vunpack.i.h.bf16 %v3457_v60  ;;  %v3458_v12 = vunpack.i.l.bf16 %v3457_v60  ;;  %v3464_v49 = vunpack.i.h.bf16 %v3462_v32  ;;  %v4400_v60 = vld [vmem:[%s4956_s6 + $0x50] ss:$8 sps:$4 sm:$0xff]  }
 0x9bb   : > { %1448 = vmatprep.subr.bf16.mxu1 %v1427_v41  ;;  %v4388_v6 = vsel %vm482_vm4, %v3403_v22, %v3404_v21  ;;  %v5010_v9 = vunpack.i.h.bf16 %v4219_v16  ;;  %v5011_v5 = vunpack.i.l.bf16 %v4219_v16  ;;  %v4405_v41 = vld [vmem:[%s4956_s6 + $0x54] ss:$8 sps:$4 sm:$0xff]   ;;  %v4414_v16 = vld [vmem:[%s4956_s6 + $0x40] ss:$8 sps:$4 sm:$0xff]   ;;  %v4419_v21 = vld [vmem:[%s4956_s6 + $0x44] ss:$8 sps:$4 sm:$0xff]   ;;  %v5012_v22 = vunpack.i.h.bf16 %v4247_v31 }
 0x9bc   : > { %v1360_v20 = vsel %vm470_vm5, %v3459_v36, %v3458_v12  ;;  %1449 = vmatpush1.bf16.msra.mxu1 %v1426_v15  ;;  %v1361_v55 = vsel %vm470_vm5, %v3458_v12, %v4173_v58  ;;  %v1339_v37 = vsel %vm446_vm7, %v3463_v53, %v4171_v57  ;;  %v1338_v25 = vsel %vm446_vm7, %v3464_v49, %v3463_v53  ;;  %v3560_v57 = vld [vmem:[%s4956_s6 + $0x110] ss:$8 sps:$4 sm:$0x7f]   ;;  %v4574_v15 = vld [vmem:[%s4956_s6 + $0x84] ss:$8 sps:$4 sm:$0xff]  }
 0x9bd   : > { %v1423_v11 = vpack.c.bf16 %v1360_v20, %v1349_v24  ;;  %v1424_v28 = vpack.c.bf16 %v1361_v55, %v1350_v51  ;;  %v1421_v18 = vpack.c.bf16 %v1339_v37, %v4092_v35  ;;  %v1420_v50 = vpack.c.bf16 %v1338_v25, %v4084_v33  ;;  %v4440_v20 = vld [vmem:[%s4956_s6 + $0x30] ss:$8 sps:$4 sm:$0xff]   ;;  %v4445_v51 = vld [vmem:[%s4956_s6 + $0x34] ss:$8 sps:$4 sm:$0xff]   ;;  %v4459_v55 = vld [vmem:[%s4956_s6 + $0x20] ss:$8 sps:$4 sm:$0xff]  }
 0x9be   : > { %v4980_v58 = vunpack.i.h.bf16 %v4180_v62  ;;  %v4983_v35 = vunpack.i.l.bf16 %v4180_v62  ;;  %v4322_v33 = vsel %vm1238_vm11, %v3560_v57, 0  ;;  %v4395_v32 = vsel %vm494_vm3, %v5011_v5, %v5010_v9  ;;  %v4466_v37 = vld [vmem:[%s4956_s6 + $0x14] ss:$8 sps:$4 sm:$0xff]   ;;  %v4483_v25 = vld [vmem:[%s4956_s6] ss:$8 sps:$4 sm:$0xff]   ;;  %5029 = vst [vmem:[#allocation15_spill] sm:$0xff] %v4574_v15 }
 0x9bf   : > { %1450 = vmatprep.subr.bf16.mxu1 %v1424_v28  ;;  %1794 = vmatpush1.bf16.msra.mxu0 %v4322_v33  ;;  %v5013_v53 = vunpack.i.l.bf16 %v4247_v31  ;;  %v5014_v12 = vunpack.i.h.bf16 %v4245_v29  ;;  %v5015_v24 = vunpack.i.l.bf16 %v4245_v29  ;;  %v4454_v29 = vld [vmem:[%s4956_s6 + $0x24] ss:$8 sps:$4 sm:$0xff]   ;;  %v4519_v9 = vld [vmem:[%s4956_s6 + $0xd0] ss:$8 sps:$4 sm:$0xff]   ;;  %v4562_v31 = vld [vmem:[%s4956_s6 + $0x94] ss:$8 sps:$4 sm:$0xff]  }
 0x9c0   : > { %1451 = vmatpush1.bf16.msra.mxu1 %v1423_v11  ;;  %v1915_v40 = vsel %vm530_vm0, %v4983_v35, %v4980_v58  ;;  %v4471_v11 = vld [vmem:[%s4956_s6 + $0x10] ss:$8 sps:$4 sm:$0xff]   ;;  %v4478_v28 = vld [vmem:[%s4956_s6 + $0x4] ss:$8 sps:$4 sm:$0xff]   ;;  %5020 = vst [vmem:[#allocation6_spill] sm:$0xff] %v4519_v9  ;;  %5027 = vst [vmem:[#allocation13_spill] sm:$0xff] %v4562_v31 }
 0x9c1   : > { %1452 = vmatprep.subr.bf16.mxu1 %v1421_v18  ;;  %v1932_v34 = vpack.c.bf16 %v4981_v14, %v1915_v40  ;;  %v4428_v36 = vsel %vm4998_vm6, %v5013_v53, %v5012_v22  ;;  %v4435_v49 = vsel %vm470_vm5, %v5015_v24, %v5014_v12  ;;  %v4490_v18 = vld [vmem:[%s4956_s6 + $0xf4] ss:$8 sps:$4 sm:$0xff]   ;;  %v4502_v57 = vld [vmem:[%s4956_s6 + $0xe4] ss:$8 sps:$4 sm:$0xff]   ;;  %v4507_v40 = vld [vmem:[%s4956_s6 + $0xe0] ss:$8 sps:$4 sm:$0xff]  }
 0x9c2   : > { %5017 = vst [vmem:[#allocation3_spill] sm:$0xff] %v4502_v57  ;;  %5018 = vst [vmem:[#allocation4_spill] sm:$0xff] %v4507_v40  ;;  %v4526_v5 = vld [vmem:[%s4956_s6 + $0xc4] ss:$8 sps:$4 sm:$0xff]   ;;  %v4531_v22 = vld [vmem:[%s4956_s6 + $0xc0] ss:$8 sps:$4 sm:$0xff]  }
 0x9c3   : > { %5021 = vst [vmem:[#allocation7_spill] sm:$0xff] %v4526_v5  ;;  %5022 = vst [vmem:[#allocation8_spill] sm:$0xff] %v4531_v22  ;;  %v4538_v53 = vld [vmem:[%s4956_s6 + $0xb4] ss:$8 sps:$4 sm:$0xff]   ;;  %v4543_v12 = vld [vmem:[%s4956_s6 + $0xb0] ss:$8 sps:$4 sm:$0xff]  }
 0x9c4   : > { %1453 = vmatpush1.bf16.msra.mxu1 %v1420_v50  ;;  %v4495_v50 = vld [vmem:[%s4956_s6 + $0xf0] ss:$8 sps:$4 sm:$0xff]   ;;  %5023 = vst [vmem:[#allocation9_spill] sm:$0xff] %v4538_v53  ;;  %5024 = vst [vmem:[#allocation10_spill] sm:$0xff] %v4543_v12  ;;  %v4550_v24 = vld [vmem:[%s4956_s6 + $0xa4] ss:$8 sps:$4 sm:$0xff]  }
 0x9c5   : > { %1740 = vmatprep.subr.bf16.mxu1 %v4360_v52  ;;  %5016 = vst [vmem:[#allocation2_spill] sm:$0xff] %v4495_v50  ;;  %5025 = vst [vmem:[#allocation11_spill] sm:$0xff] %v4550_v24  ;;  %v4555_v58 = vld [vmem:[%s4956_s6 + $0xa0] ss:$8 sps:$4 sm:$0xff]   ;;  %v5031_v35 = vmov 0.0   ;;  %vm5000_vm6 = vcmask 244736  }
 0x9c6   : > { %5026 = vst [vmem:[#allocation12_spill] sm:$0xff] %v4555_v58  ;;  %v4579_v14 = vld [vmem:[%s4956_s6 + $0x80] ss:$8 sps:$4 sm:$0xff]  }
 0x9c7   : > { %2929 = vmatmul.mubr.msk.bf16.vlgmr.msra.gmra.mxu1 %vm551_vm8, %v4188_v2  ;;  %v4328_v2 = vld [vmem:[%s4956_s6 + $0x104] ss:$8 sps:$4 sm:$0xff]   ;;  %5030 = vst [vmem:[#allocation16_spill] sm:$0xff] %v4579_v14 }
 0x9c8   : > { %1795 = vmatprep.subr.bf16.mxu0 %v4328_v2  ;;  %1741 = vmatpush1.bf16.msra.mxu1 %v4367_v0 }
 0x9c9   : > { %1796 = vmatpush1.bf16.msra.mxu0 %v4333_v8  ;;  %1742 = vmatprep.subr.bf16.mxu1 %v4374_v10 }
 0x9ca   : > { %1940 = vmatprep.subr.bf16.mxu0 %v1932_v34  ;;  %v4514_v34 = vld [vmem:[%s4956_s6 + $0xd4] ss:$8 sps:$4 sm:$0xff]  }
 0x9cb   : > { %5019 = vst [vmem:[#allocation5_spill] sm:$0xff] %v4514_v34 }
 0x9cc   : > { %1743 = vmatpush1.bf16.msra.mxu1 %v4379_v3 }
 0x9cd   : > { %1744 = vmatprep.subr.bf16.mxu1 %v4405_v41 }
 0x9d0   : > { %1745 = vmatpush1.bf16.msra.mxu1 %v4400_v60 }
 0x9d1   : > { %1746 = vmatprep.subr.bf16.mxu1 %v4419_v21 }
 0x9d4   : > { %1747 = vmatpush1.bf16.msra.mxu1 %v4414_v16 }
 0x9d5   : > { %1748 = vmatprep.subr.bf16.mxu1 %v4445_v51 }
 0x9d8   : > { %1749 = vmatpush1.bf16.msra.mxu1 %v4440_v20 }
 0x9d9   : > { %1750 = vmatprep.subr.bf16.mxu1 %v4454_v29 }
 0x9dc   : > { %1751 = vmatpush1.bf16.msra.mxu1 %v4459_v55 }
 0x9dd   : > { %1752 = vmatprep.subr.bf16.mxu1 %v4466_v37 }
 0x9e0   : > { %1753 = vmatpush1.bf16.msra.mxu1 %v4471_v11 }
 0x9e1   : > { %1754 = vmatprep.subr.bf16.mxu1 %v4478_v28 }
 0x9e4   : > { %1755 = vmatpush1.bf16.msra.mxu1 %v4483_v25 }
 0x9e5   : > { %1756 = vmatprep.subr.bf16.mxu1 %v4490_v18 }
 0x9e8   : > { %1757 = vmatpush2.bf16.msra.mxu1 %v4495_v50 }
 0x9e9   : > { %1758 = vmatprep.subr.bf16.mxu1 %v4502_v57  ;;  %v5032_v57 = vunpack.i.l.bf16 %v4180_v62 }
 0x9ec   : > { %1759 = vmatpush2.bf16.msra.mxu1 %v4507_v40 }
 0x9ed   : > { %1760 = vmatprep.subr.bf16.mxu1 %v4514_v34 }
 0x9f0   : > { %1761 = vmatpush2.bf16.msra.mxu1 %v4519_v9 }
 0x9f1   : > { %1762 = vmatprep.subr.bf16.mxu1 %v4526_v5 }
 0x9f4   : > { %1763 = vmatpush2.bf16.msra.mxu1 %v4531_v22 }
 0x9f5   : > { %1764 = vmatprep.subr.bf16.mxu1 %v4538_v53 }
 0x9f8   : > { %1765 = vmatpush2.bf16.msra.mxu1 %v4543_v12 }
 0x9f9   : > { %1766 = vmatprep.subr.bf16.mxu1 %v4550_v24 }
 0x9fc   : > { %1767 = vmatpush2.bf16.msra.mxu1 %v4555_v58 }
 0x9fd   : > { %1768 = vmatprep.subr.bf16.mxu1 %v4562_v31 }
 0xa00   : > { %1769 = vmatpush2.bf16.msra.mxu1 %v4567_v17 }
 0xa01   : > { %1770 = vmatprep.subr.bf16.mxu1 %v4574_v15 }
 0xa04   : > { %1771 = vmatpush2.bf16.msra.mxu1 %v4579_v14  ;;  %v1914_v14 = vsel %vm530_vm0, %v4178_v61, %v5032_v57  ;;  %v5036_v61 = vpack.c.bf16 %v4210_v1, %v4215_v13 }
 0xa05   : > { %3225 = vmatprep.subr.bf16.mxu1 %v5031_v35 }
 0xa53   : > { %v1513_v58 = vpop.f32.mrf.mxu0 }
 0xa54   : > { %v1521_v31 = vand.u32 2147483647, %v1513_v58  ;;  %vm1542_vm14 = vcmp.ge.f32.partialorder %v1513_v58, 0.0  ;;  %v5037_v58 = vpack.c.bf16 %v4395_v32, %v4388_v6  ;;  %v1919_v6 = vpack.c.bf16 %v4277_v63, %v4115_v45 }
 0xa55   : > { %v3209_v24 = vpop.f32.mrf.mxu0 }
 0xa56   : > { %v1524_v17 = vsub.f32 0.0, %v1521_v31  ;;  %v5033_v24 = vmov 1.0  }
 0xa57   : > { %v1516_v12 = vpop.f32.mrf.mxu0  ;;  %v1931_v31 = vpack.c.bf16 %v5033_v24, %v1914_v14  ;;  %v5038_v14 = vunpack.i.l.bf16 %v4271_v56 }
 0xa58   : > { %v1529_v53 = vmul.f32 1.442695, %v1524_v17  ;;  %v5034_v17 = vmov 0  }
 0xa59   : > { %v3210_v22 = vpop.f32.mrf.mxu0 }
 0xa5a   : > { %3612 = vpow2.f32 %v1529_v53 }
 0xa67   : > { %v3613_v5 = vpop.eup %3612 }
 0xa68   : > { %v1533_v9 = vadd.f32 1.0, %v3613_v5 }
 0xa6a   : > { %3614 = vrcp.f32 %v1533_v9  ;;  %v5035_v9 = vpack.c.bf16 %v4355_v4, %v4348_v48  ;;  %v5040_v48 = vpack.c.bf16 %v4435_v49, %v4428_v36 }
 0xa77   : > { %v3615_v34 = vpop.eup %3614 }
 0xa78   : > { %v1545_v40 = vmul.f32 %v3615_v34, %v3613_v5  ;;  %v3424_v5 = vunpack.i.h.bf16 %v4271_v56 }
 0xa7a   : > { %v1548_v15 = vsel %vm1542_vm14, %v3615_v34, %v1545_v40  ;;  %v5041_v40 = vpack.c.bf16 %v4262_v44, %v4267_v46  ;;  %v3636_v44 = vld [vmem:[%s4951_s1] sm:$0xf]  ;;  %v1921_v53 = vpack.c.bf16 %v3424_v5, %v4106_v43  ;;  %v3640_v43 = vld [vmem:[%s4952_s2 + $0x30] sm:$0xff]  }
 0xa7b   : > { %v1551_v50 = vpack.c.bf16 %v1548_v15, %v1548_v15  ;;  %v1838_v15 = vsel %vm446_vm7, %v5038_v14, %v3424_v5  ;;  %v3642_v14 = vld [vmem:[%s4952_s2 + $0x28] sm:$0xff]  }
 0xa7c   : > { %v1920_v1 = vpack.c.bf16 %v1838_v15, %v4103_v42  ;;  %v5042_v42 = vunpack.i.h.bf16 %v4180_v62  ;;  %v3643_v15 = vld [vmem:[%s4952_s2 + $0x60] sm:$0xff]  }
 0xa7d   : > { %2968 = vmatmul.mubr.msk.bf16.vlgmr.msra.gmra.mxu0 %vm5000_vm6, %v1551_v50  ;;  %v5039_v50 = vpack.c.bf16 %v4236_v26, %v4241_v27 }
 0xa7e   : > { %1941 = vmatpush1.bf16.msra.mxu0 %v1931_v31  ;;  %1966 = vmatprep.mubr.bf16.mxu0 %v5034_v17  ;;  %v1933_v45 = vpack.c.bf16 %v5033_v24, %v5042_v42  ;;  %v3641_v31 = vld [vmem:[%s4952_s2 + $0x68] sm:$0xff]  }
 0xa7f   : > { %1942 = vmatprep.subr.bf16.mxu0 %v5035_v9 }
 0xa82   : > { %1943 = vmatpush1.bf16.msra.mxu0 %v5036_v61 }
 0xa83   : > { %1944 = vmatprep.subr.bf16.mxu0 %v5037_v58 }
 0xa86   : > { %1945 = vmatpush1.bf16.msra.mxu0 %v5039_v50 }
 0xa87   : > { %1946 = vmatprep.subr.bf16.mxu0 %v5040_v48  ;;  %v1472_v4 = vpop.f32.mrf.mxu1 }
 0xa88   : > { %v1519_v13 = vand.u32 2147483647, %v1472_v4  ;;  %vm1540_vm14 = vcmp.ge.f32.partialorder %v1472_v4, 0.0 }
 0xa89   : > { %v1474_v57 = vpop.f32.mrf.mxu1 }
 0xa8a   : > { %v1522_v32 = vsub.f32 0.0, %v1519_v13  ;;  %v1520_v56 = vand.u32 2147483647, %v1474_v57  ;;  %1947 = vmatpush1.bf16.msra.mxu0 %v5041_v40  ;;  %vm1541_vm6 = vcmp.ge.f32.partialorder %v1474_v57, 0.0  ;;  %v3645_v13 = vld [vmem:[%s4952_s2 + $0x58] sm:$0xff]   ;;  %v3651_v40 = vld [vmem:[%s4952_s2 + $0x40] sm:$0xff]  }
 0xa8b   : > { %1948 = vmatprep.subr.bf16.mxu0 %v1920_v1  ;;  %v1476_v26 = vpop.f32.mrf.mxu1  ;;  %v3644_v1 = vld [vmem:[%s4952_s2 + $0x20] sm:$0xff]   ;;  %v3646_v57 = vld [vmem:[%s4952_s2 + $0x18] sm:$0xff]  }
 0xa8c   : > { %v1525_v27 = vmul.f32 1.442695, %v1522_v32  ;;  %v1523_v34 = vsub.f32 0.0, %v1520_v56  ;;  %v3648_v32 = vld [vmem:[%s4952_s2 + $0x10] sm:$0xff]   ;;  %v3650_v56 = vld [vmem:[%s4952_s2 + $0x8] sm:$0xff]   ;;  %v3652_v26 = vld [vmem:[%s4952_s2] sm:$0xff]  }
 0xa8d   : > { %v1477_v36 = vpop.f32.mrf.mxu1 }
 0xa8e   : > { %3616 = vpow2.f32 %v1525_v27  ;;  %v1527_v49 = vmul.f32 1.442695, %v1523_v34  ;;  %1949 = vmatpush1.bf16.msra.mxu0 %v1919_v6  ;;  %v3647_v6 = vld [vmem:[%s4952_s2 + $0x50] sm:$0xff]  }
 0xa8f   : > { %3211 = vmatprep.subr.bf16.mxu0 %v5031_v35 }
 0xa90   : > { %3618 = vpow2.f32 %v1527_v49 }
 0xa91   : > { %2972 = vmatmul.mubr.msk.bf16.vlgmr.msra.gmra.mxu0 %vm551_vm8, %v3636_v44 }
 0xa92   : > { %3212 = vmatpush3.bf16.msra.mxu0 %v1933_v45  ;;  %3221 = vmatprep.mubr.msk.bf16.mxu0 %vm3693_vm9, %v5031_v35 }
 0xa93   : > { %3213 = vmatprep.subr.bf16.mxu0 %v5031_v35 }
 0xa96   : > { %3214 = vmatpush3.bf16.msra.mxu0 %v4204_v7  ;;  %v3637_v7 = vld [vmem:[%s4952_s2 + $0x78] sm:$0xff]  }
 0xa97   : > { %3215 = vmatprep.subr.bf16.mxu0 %v5031_v35 }
 0xa9a   : > { %3216 = vmatpush3.bf16.msra.mxu0 %v4231_v23  ;;  %v3638_v23 = vld [vmem:[%s4952_s2 + $0x38] sm:$0xff]  }
 0xa9b   : > { %v3617_v62 = vpop.eup %3616  ;;  %3217 = vmatprep.subr.bf16.mxu0 %v5031_v35 }
 0xa9c   : > { %v1531_v46 = vadd.f32 1.0, %v3617_v62 }
 0xa9d   : > { %v3619_v63 = vpop.eup %3618 }
 0xa9e   : > { %3620 = vrcp.f32 %v1531_v46  ;;  %v1532_v22 = vadd.f32 1.0, %v3619_v63  ;;  %3218 = vmatpush3.bf16.msra.mxu0 %v4257_v38  ;;  %v3639_v38 = vld [vmem:[%s4952_s2 + $0x70] sm:$0xff]  }
 0xa9f   : > { %3219 = vmatprep.subr.bf16.mxu0 %v5031_v35 }
 0xaa0   : > { %3622 = vrcp.f32 %v1532_v22 }
 0xaa2   : > { %3220 = vmatpush3.bf16.msra.mxu0 %v1921_v53 }
 0xaa3   : > { %3059 = vmatprep.subr.bf16.mxu0 %v3637_v7 }
 0xaa5   : > { %3222 = vmatmul.mubr.msk.bf16.vlgmr.msra.gmra.mxu0 %vm551_vm8, %v3636_v44 }
 0xaa6   : > { %3060 = vmatpush3.bf16.msra.mxu0 %v3638_v23 }
 0xaa7   : > { %3061 = vmatprep.subr.bf16.mxu0 %v3639_v38 }
 0xaaa   : > { %3062 = vmatpush3.bf16.msra.mxu0 %v3640_v43 }
 0xaab   : > { %v3621_v12 = vpop.eup %3620  ;;  %3063 = vmatprep.subr.bf16.mxu0 %v3641_v31 }
 0xaac   : > { %v1543_v9 = vmul.f32 %v3621_v12, %v3617_v62 }
 0xaad   : > { %v3623_v5 = vpop.eup %3622 }
 0xaae   : > { %v1546_v61 = vsel %vm1540_vm14, %v3621_v12, %v1543_v9  ;;  %v1544_v58 = vmul.f32 %v3623_v5, %v3619_v63  ;;  %3064 = vmatpush3.bf16.msra.mxu0 %v3642_v14 }
 0xaaf   : > { %3065 = vmatprep.subr.bf16.mxu0 %v3643_v15  ;;  %v1549_v50 = vpack.c.bf16 %v1546_v61, %v1546_v61 }
 0xab0   : > { %v1547_v48 = vsel %vm1541_vm6, %v3623_v5, %v1544_v58  ;;  %vm5068_vm6 = vcmask 244736  }
 0xab1   : > { %v1550_v4 = vpack.c.bf16 %v1547_v48, %v1547_v48 }
 0xab2   : > { %3066 = vmatpush3.bf16.msra.mxu0 %v3644_v1 }
 0xab3   : > { %1772 = vmatprep.mubr.bf16.mxu1 %v1550_v4  ;;  %3067 = vmatprep.subr.bf16.mxu0 %v3645_v13 }
 0xab4   : > { %1773 = vmatmul.mubr.bf16.vlgmr.msra.gmra.mxu1 %v1549_v50 }
 0xab5   : > { %3226 = vmatpush3.bf16.msra.mxu1 %v3918_v39  ;;  %3227 = vmatprep.mubr.msk.bf16.mxu1 %vm3693_vm9, %v5031_v35  ;;  %v3649_v39 = vld [vmem:[%s4952_s2 + $0x48] sm:$0xff]  }
 0xab6   : > { %3068 = vmatpush3.bf16.msra.mxu0 %v3646_v57  ;;  %3231 = vmatprep.subr.bf16.mxu1 %v5031_v35 }
 0xab7   : > { %3069 = vmatprep.subr.bf16.mxu0 %v3647_v6 }
 0xaba   : > { %3070 = vmatpush3.bf16.msra.mxu0 %v3648_v32 }
 0xabb   : > { %3071 = vmatprep.subr.bf16.mxu0 %v3649_v39 }
 0xabe   : > { %3072 = vmatpush3.bf16.msra.mxu0 %v3650_v56 }
 0xabf   : > { %3073 = vmatprep.subr.bf16.mxu0 %v3651_v40 }
 0xac2   : > { %3074 = vmatpush3.bf16.msra.mxu0 %v3652_v26 }
 0xac3   : > { %3245 = vmatprep.subr.bf16.mxu0 %v5031_v35 }
 0xb3d   : > { %v1815_v27 = vpop.f32.mrf.mxu0 }
 0xb3f   : > { %v1817_v34 = vpop.f32.mrf.mxu0 }
 0xb41   : > { %v1819_v36 = vpop.f32.mrf.mxu0 }
 0xb43   : > { %v1820_v49 = vpop.f32.mrf.mxu0 }
 0xb51   : > { %v1968_v42 = vpop.f32.mrf.mxu0 }
 0xb52   : > { %v2015_v45 = vmax.f32 %v1968_v42, 0.0 }
 0xb53   : > { %v1970_v44 = vpop.f32.mrf.mxu0 }
 0xb54   : > { %2021 = vrot.lane.b32.xlu1 %v2015_v45, %s3690_s19  ;;  %v2016_v22 = vmax.f32 %v1970_v44, 0.0 }
 0xb55   : > { %v1972_v62 = vpop.f32.mrf.mxu0 }
 0xb57   : > { %v1973_v46 = vpop.f32.mrf.mxu0 }
 0xb58   : > { %v3653_v46 = vld [vmem:[%s4953_s3 + $0x18] sm:$0xff]  }
 0xb65   : > { %v2009_v63 = vpop.f32.mrf.mxu0 }
 0xb66   : > { %v2017_v53 = vmax.f32 %v2009_v63, 0.0  ;;  %v3654_v63 = vld [vmem:[%s4953_s3 + $0x10] sm:$0xff]  }
 0xb67   : > { %v3223_v7 = vpop.f32.mrf.mxu0 }
 0xb68   : > { %v3465_v23 = vpack.i.bf16 %v2017_v53, %v2016_v22 }
 0xb69   : > { %v2012_v38 = vpop.f32.mrf.mxu0 }
 0xb6a   : > { %3466 = vrot.lane.b32.xlu0 %v3465_v23, %s3690_s19 }
 0xb6b   : > { %v3224_v43 = vpop.f32.mrf.mxu0 }
 0xb74   : > { %v1774_v12 = vpop.f32.mrf.mxu1 }
 0xb75   : > { %v1816_v31 = vadd.f32 %v1815_v27, %v1774_v12 }
 0xb76   : > { %v1776_v9 = vpop.f32.mrf.mxu1 }
 0xb77   : > { %1822 = vst [vmem:[%s4694_s21] sm:$0xff] %v1816_v31  ;;  %v1818_v5 = vadd.f32 %v1817_v34, %v1776_v9 }
 0xb78   : > { %v1778_v61 = vpop.f32.mrf.mxu1 }
 0xb79   : > { %1823 = vst [vmem:[%s4694_s21 + $0x8] sm:$0xff] %v1818_v5 }
 0xb7a   : > { %v1779_v58 = vpop.f32.mrf.mxu1 }
 0xbc6   : > { %v2022_v48 = vpop.permute.xlu1 %2021 }
 0xbdc   : > { %v3467_v14 = vpop.permute.xlu0 %3466 }
 0xbdd   : > { %v3469_v15 = vunpack.i.h.bf16 %v3467_v14  ;;  %v3468_v50 = vunpack.i.l.bf16 %v3467_v14 }
 0xbdf   : > { %v2034_v4 = vmax.f32 %v2017_v53, %v3469_v15  ;;  %v2028_v1 = vsel %vm446_vm7, %v3468_v50, %v3469_v15  ;;  %v2027_v13 = vsel %vm446_vm7, %v2022_v48, %v3468_v50  ;;  %v3657_v53 = vld [vmem:[%s4955_s5 + $0x64] ss:$12 sps:$4 sm:$0x7f]  }
 0xbe0   : > { %v2032_v57 = vmax.f32 %v2015_v45, %v2027_v13  ;;  %v2033_v6 = vmax.f32 %v2016_v22, %v2028_v1  ;;  %v3656_v22 = vld [vmem:[%s4953_s3] sm:$0xff]  }
 0xbe2   : > { %2038 = vrot.lane.b32.xlu1 %v2032_v57, %s5009_s25  ;;  %v3470_v32 = vpack.i.bf16 %v2034_v4, %v2033_v6 }
 0xbe4   : > { %3471 = vrot.lane.b32.xlu0 %v3470_v32, %s5009_s25 }
 0xc54   : > { %v2039_v26 = vpop.permute.xlu1 %2038 }
 0xc56   : > { %v3472_v39 = vpop.permute.xlu0 %3471 }
 0xc57   : > { %v3474_v56 = vunpack.i.h.bf16 %v3472_v39  ;;  %v3473_v40 = vunpack.i.l.bf16 %v3472_v39 }
 0xc59   : > { %v2051_v27 = vmax.f32 %v2034_v4, %v3474_v56  ;;  %v2044_v34 = vsel %vm470_vm5, %v2039_v26, %v3473_v40  ;;  %v2045_v36 = vsel %vm470_vm5, %v3473_v40, %v3474_v56  ;;  %v3658_v26 = vld [vmem:[%s4951_s1 + $0x4] sm:$0xf] }
 0xc5a   : > { %v2049_v49 = vmax.f32 %v2032_v57, %v2044_v34  ;;  %v2050_v42 = vmax.f32 %v2033_v6, %v2045_v36 }
 0xc5b   : > { %v2054_v44 = vpack.c.bf16 %v2051_v27, %v2051_v27  ;;  %v3659_v27 = vld [vmem:[%s4954_s4] sm:$0xff]  }
 0xc5c   : > { %v2053_v62 = vpack.c.bf16 %v2050_v42, %v2050_v42  ;;  %v2052_v45 = vpack.c.bf16 %v2049_v49, %v2049_v49 }
 0xc5d   : > { %3228 = vmatmul.mubr.msk.bf16.vlgmr.msra.gmra.mxu1 %vm777_vm12, %v2054_v44 }
 0xc5e   : > { %2090 = vmatprep.mubr.bf16.mxu0 %v2053_v62  ;;  %3241 = vmatprep.mubr.msk.bf16.mxu1 %vm3693_vm9, %v5031_v35 }
 0xc5f   : > { %2091 = vmatmul.mubr.bf16.vlgmr.msra.gmra.mxu0 %v2052_v45 }
 0xc60   : > { %3246 = vmatpush3.bf16.msra.mxu0 %v3966_v30  ;;  %3255 = vmatprep.mubr.msk.bf16.mxu0 %vm3693_vm9, %v5031_v35  ;;  %v3655_v30 = vld [vmem:[%s4953_s3 + $0x8] sm:$0xff]  }
 0xc61   : > { %3247 = vmatprep.subr.bf16.mxu0 %v5031_v35 }
 0xc64   : > { %3248 = vmatpush3.bf16.msra.mxu0 %v3653_v46 }
 0xc65   : > { %3249 = vmatprep.subr.bf16.mxu0 %v5031_v35 }
 0xc68   : > { %3250 = vmatpush3.bf16.msra.mxu0 %v3654_v63 }
 0xc69   : > { %3251 = vmatprep.subr.bf16.mxu0 %v5031_v35 }
 0xc6c   : > { %3252 = vmatpush3.bf16.msra.mxu0 %v3655_v30 }
 0xc6d   : > { %3253 = vmatprep.subr.bf16.mxu0 %v5031_v35 }
 0xc70   : > { %3254 = vmatpush3.bf16.msra.mxu0 %v3656_v22  ;;  %v3660_v22 = vld [vmem:[%s4955_s5 + $0x4c] ss:$12 sps:$4 sm:$0xff]  }
 0xc71   : > { %2979 = vmatprep.subr.msk.bf16.mxu0 %vm1238_vm11, %v3657_v53  ;;  %v3661_v53 = vld [vmem:[%s4955_s5 + $0x48] ss:$12 sps:$4 sm:$0xff]  }
 0xd1d   : > { %v2132_v7 = vpop.f32.mrf.mxu1 }
 0xd1f   : > { %v3075_v23 = vpop.f32.mrf.mxu0  ;;  %v3229_v38 = vpop.f32.mrf.mxu1 }
 0xd20   : > { %v3665_v38 = vld [vmem:[%s4955_s5 + $0x18] ss:$12 sps:$4 sm:$0xff]  }
 0xd21   : > { %v3076_v43 = vpop.f32.mrf.mxu0  ;;  %v2135_v12 = vpop.f32.mrf.mxu1 }
 0xd22   : > { %v3077_v31 = vadd.f32 %v3076_v43, %v3075_v23  ;;  %v3664_v23 = vld [vmem:[%s4955_s5 + $0x1c] ss:$12 sps:$4 sm:$0xff]   ;;  %v3666_v43 = vld [vmem:[%s4955_s5 + $0x4] ss:$12 sps:$4 sm:$0xff]   ;;  %v3667_v12 = vld [vmem:[%s4955_s5] ss:$12 sps:$4 sm:$0xff]  }
 0xd23   : > { %v3078_v9 = vpop.f32.mrf.mxu0  ;;  %v3230_v5 = vpop.f32.mrf.mxu1 }
 0xd24   : > { %v2133_v61 = vadd.f32 %v3077_v31, %v2132_v7  ;;  %v3662_v7 = vld [vmem:[%s4955_s5 + $0x34] ss:$12 sps:$4 sm:$0xff]  }
 0xd25   : > { %v3079_v58 = vpop.f32.mrf.mxu0 }
 0xd26   : > { %2154 = vrot.lane.b32.xlu1 %v2133_v61, %s3685_s15  ;;  %2160 = vrot.lane.b32.xlu0 %v2133_v61, %s3695_s26 }
 0xd2a   : > { %2148 = vrot.lane.b32.xlu1 %v2133_v61, %s5043_s29  ;;  %2157 = vrot.lane.b32.xlu0 %v2133_v61, %s5044_s22 }
 0xd2e   : > { %2142 = vrot.lane.b32.xlu1 %v2133_v61, %s3688_s18  ;;  %2151 = vrot.lane.b32.xlu0 %v2133_v61, %s5045_s23 }
 0xd32   : > { %2139 = vrot.lane.b32.xlu1 %v2133_v61, %s3690_s19  ;;  %2145 = vrot.lane.b32.xlu0 %v2133_v61, %s5046_s30 }
 0xd98   : > { %v2155_v14 = vpop.permute.xlu1 %2154  ;;  %v2161_v15 = vpop.permute.xlu0 %2160 }
 0xd99   : > { %v2167_v50 = vpack.c.bf16 %v5033_v24, %v2161_v15 }
 0xd9b   : > { %3232 = vmatpush3.bf16.msra.mxu1 %v2167_v50 }
 0xd9c   : > { %v2149_v48 = vpop.permute.xlu1 %2148  ;;  %v2158_v4 = vpop.permute.xlu0 %2157  ;;  %3233 = vmatprep.subr.bf16.mxu1 %v5031_v35 }
 0xd9d   : > { %v2166_v1 = vpack.c.bf16 %v2158_v4, %v2155_v14 }
 0xd9f   : > { %3234 = vmatpush3.bf16.msra.mxu1 %v2166_v1 }
 0xda0   : > { %v2143_v13 = vpop.permute.xlu1 %2142  ;;  %v2152_v57 = vpop.permute.xlu0 %2151  ;;  %3235 = vmatprep.subr.bf16.mxu1 %v5031_v35 }
 0xda1   : > { %v2165_v6 = vpack.c.bf16 %v2152_v57, %v2149_v48 }
 0xda3   : > { %3236 = vmatpush3.bf16.msra.mxu1 %v2165_v6 }
 0xda4   : > { %v2146_v32 = vpop.permute.xlu0 %2145  ;;  %3237 = vmatprep.subr.bf16.mxu1 %v5031_v35  ;;  %v2140_v56 = vpop.permute.xlu1 %2139 }
 0xda5   : > { %v2164_v39 = vpack.c.bf16 %v2146_v32, %v2143_v13  ;;  %v2163_v40 = vpack.c.bf16 %v2140_v56, %v2133_v61 }
 0xda7   : > { %3238 = vmatpush3.bf16.msra.mxu1 %v2164_v39 }
 0xda8   : > { %3239 = vmatprep.subr.bf16.mxu1 %v5031_v35 }
 0xdab   : > { %3240 = vmatpush3.bf16.msra.mxu1 %v2163_v40 }
 0xdac   : > { %3259 = vmatprep.subr.bf16.mxu1 %v5031_v35 }
 0xdae   : > { %3242 = vmatmul.mubr.msk.bf16.vlgmr.msra.gmra.mxu1 %vm551_vm8, %v3658_v26 }
 0xdaf   : > { %3260 = vmatpush3.bf16.msra.mxu1 %v3659_v27  ;;  %3261 = vmatprep.mubr.msk.bf16.mxu1 %vm3693_vm9, %v5031_v35 }
 0xdb0   : > { %3265 = vmatprep.subr.bf16.mxu1 %v5031_v35 }
 0xe6e   : > { %v2202_v34 = vpop.f32.mrf.mxu1 }
 0xe6f   : > { %v2208_v36 = vmax.f32 %v2202_v34, 0.0 }
 0xe70   : > { %v3243_v49 = vpop.f32.mrf.mxu1 }
 0xe71   : > { %2210 = vrot.lane.b32.xlu0 %v2208_v36, %s3690_s19  ;;  %v3668_v49 = vld [vmem:[%s4951_s1 + $0x8] sm:$0xf] }
 0xe72   : > { %v2205_v42 = vpop.f32.mrf.mxu1 }
 0xe73   : > { %v3669_v42 = vld [vmem:[%s4955_s5 + $0x50] ss:$12 sps:$4 sm:$0xff]  }
 0xe74   : > { %v3244_v44 = vpop.f32.mrf.mxu1 }
 0xe75   : > { %v3670_v44 = vld [vmem:[%s4955_s5 + $0x38] ss:$12 sps:$4 sm:$0xff]  }
 0xee3   : > { %v2211_v62 = vpop.permute.xlu0 %2210 }
 0xee4   : > { %v2213_v45 = vmax.f32 %v2208_v36, %v2211_v62  ;;  %v3672_v62 = vld [vmem:[%s4955_s5 + $0x8] ss:$12 sps:$4 sm:$0xff]  }
 0xee6   : > { %2215 = vrot.lane.b32.xlu1 %v2213_v45, %s5046_s30 }
 0xf58   : > { %v2216_v46 = vpop.permute.xlu1 %2215 }
 0xf59   : > { %v2218_v63 = vmax.f32 %v2213_v45, %v2216_v46 }
 0xf5b   : > { %v2219_v30 = vpack.c.bf16 %v2218_v63, %v2218_v63 }
 0xf5d   : > { %3256 = vmatmul.mubr.msk.bf16.vlgmr.msra.gmra.mxu0 %vm980_vm15, %v2219_v30 }
 0xf5e   : > { %2389 = vmatpush1.bf16.msra.mxu0 %v4017_v59  ;;  %2414 = vmatprep.mubr.bf16.mxu0 %v5034_v17  ;;  %v3663_v59 = vld [vmem:[%s4955_s5 + $0x30] ss:$12 sps:$4 sm:$0xff]  }
 0xf5f   : > { %2390 = vmatprep.subr.bf16.mxu0 %v3660_v22 }
 0xf62   : > { %2391 = vmatpush1.bf16.msra.mxu0 %v3661_v53 }
 0xf63   : > { %2392 = vmatprep.subr.bf16.mxu0 %v3662_v7 }
 0xf66   : > { %2393 = vmatpush1.bf16.msra.mxu0 %v3663_v59 }
 0xf67   : > { %2394 = vmatprep.subr.bf16.mxu0 %v3664_v23 }
 0xf6a   : > { %2395 = vmatpush1.bf16.msra.mxu0 %v3665_v38 }
 0xf6b   : > { %2396 = vmatprep.subr.bf16.mxu0 %v3666_v43 }
 0xf6e   : > { %2397 = vmatpush1.bf16.msra.mxu0 %v3667_v12 }
0x101d   : > { %v4783_v31 = vpop.f32.mrf.mxu0 }
0x101e   : > { %v2263_v9 = vpack.c.bf16 %v4783_v31, %v4783_v31 }
0x101f   : > { %v3257_v5 = vpop.f32.mrf.mxu0 }
0x1020   : > { %3262 = vmatmul.mubr.msk.bf16.vlgmr.msra.gmra.mxu1 %vm1038_vm10, %v2263_v9 }
0x1021   : > { %v2260_v61 = vpop.f32.mrf.mxu0  ;;  %3275 = vmatprep.mubr.msk.bf16.mxu1 %vm3693_vm9, %v5031_v35 }
0x1023   : > { %v3258_v58 = vpop.f32.mrf.mxu0 }
0x10e0   : > { %v2301_v14 = vpop.f32.mrf.mxu1 }
0x10e1   : > { %2323 = vrot.lane.b32.xlu1 %v2301_v14, %s3685_s15  ;;  %2329 = vrot.lane.b32.xlu0 %v2301_v14, %s3695_s26 }
0x10e2   : > { %v3263_v15 = vpop.f32.mrf.mxu1 }
0x10e4   : > { %v2304_v50 = vpop.f32.mrf.mxu1 }
0x10e5   : > { %2317 = vrot.lane.b32.xlu1 %v2301_v14, %s5043_s29  ;;  %2326 = vrot.lane.b32.xlu0 %v2301_v14, %s5044_s22 }
0x10e6   : > { %v3264_v48 = vpop.f32.mrf.mxu1 }
0x10e9   : > { %2311 = vrot.lane.b32.xlu1 %v2301_v14, %s3688_s18  ;;  %2320 = vrot.lane.b32.xlu0 %v2301_v14, %s5045_s23 }
0x10ed   : > { %2308 = vrot.lane.b32.xlu1 %v2301_v14, %s3690_s19  ;;  %2314 = vrot.lane.b32.xlu0 %v2301_v14, %s5046_s30 }
0x1153   : > { %v2324_v4 = vpop.permute.xlu1 %2323  ;;  %v2330_v1 = vpop.permute.xlu0 %2329 }
0x1154   : > { %v2336_v13 = vpack.c.bf16 %v5033_v24, %v2330_v1 }
0x1156   : > { %3266 = vmatpush3.bf16.msra.mxu1 %v2336_v13 }
0x1157   : > { %v2318_v57 = vpop.permute.xlu1 %2317  ;;  %v2327_v6 = vpop.permute.xlu0 %2326  ;;  %3267 = vmatprep.subr.bf16.mxu1 %v5031_v35 }
0x1158   : > { %v2335_v32 = vpack.c.bf16 %v2327_v6, %v2324_v4 }
0x115a   : > { %3268 = vmatpush3.bf16.msra.mxu1 %v2335_v32 }
0x115b   : > { %v2312_v39 = vpop.permute.xlu1 %2311  ;;  %v2321_v56 = vpop.permute.xlu0 %2320  ;;  %3269 = vmatprep.subr.bf16.mxu1 %v5031_v35 }
0x115c   : > { %v2334_v40 = vpack.c.bf16 %v2321_v56, %v2318_v57 }
0x115e   : > { %3270 = vmatpush3.bf16.msra.mxu1 %v2334_v40 }
0x115f   : > { %v2315_v26 = vpop.permute.xlu0 %2314  ;;  %3271 = vmatprep.subr.bf16.mxu1 %v5031_v35  ;;  %v2309_v34 = vpop.permute.xlu1 %2308 }
0x1160   : > { %v2333_v27 = vpack.c.bf16 %v2315_v26, %v2312_v39  ;;  %v2332_v36 = vpack.c.bf16 %v2309_v34, %v2301_v14 }
0x1162   : > { %3272 = vmatpush3.bf16.msra.mxu1 %v2333_v27 }
0x1163   : > { %3273 = vmatprep.subr.bf16.mxu1 %v5031_v35 }
0x1166   : > { %3274 = vmatpush3.bf16.msra.mxu1 %v2332_v36 }
0x1167   : > { %3279 = vmatprep.subr.bf16.mxu1 %v5031_v35 }
0x1169   : > { %3276 = vmatmul.mubr.msk.bf16.vlgmr.msra.gmra.mxu1 %vm551_vm8, %v3668_v49 }
0x116a   : > { %3280 = vmatpush3.bf16.msra.mxu1 %v4050_v19  ;;  %3289 = vmatprep.mubr.msk.bf16.mxu1 %vm3693_vm9, %v5031_v35  ;;  %v3671_v19 = vld [vmem:[%s4955_s5 + $0x20] ss:$12 sps:$4 sm:$0xff]  }
0x116b   : > { %3281 = vmatprep.subr.bf16.mxu1 %v5031_v35 }
0x116e   : > { %3282 = vmatpush3.bf16.msra.mxu1 %v3669_v42 }
0x116f   : > { %3283 = vmatprep.subr.bf16.mxu1 %v5031_v35 }
0x1172   : > { %3284 = vmatpush3.bf16.msra.mxu1 %v3670_v44 }
0x1173   : > { %3285 = vmatprep.subr.bf16.mxu1 %v5031_v35 }
0x1176   : > { %3286 = vmatpush3.bf16.msra.mxu1 %v3671_v19 }
0x1177   : > { %3287 = vmatprep.subr.bf16.mxu1 %v5031_v35 }
0x117a   : > { %3288 = vmatpush3.bf16.msra.mxu1 %v3672_v62 }
0x117b   : > { %3293 = vmatprep.subr.bf16.mxu1 %v5031_v35 }
0x1229   : > { %v2371_v45 = vpop.f32.mrf.mxu1 }
0x122a   : > { %v2377_v46 = vmax.f32 %v2371_v45, 0.0 }
0x122b   : > { %v3277_v63 = vpop.f32.mrf.mxu1 }
0x122c   : > { %v2378_v30 = vpack.c.bf16 %v2377_v46, %v2377_v46 }
0x122d   : > { %v2374_v22 = vpop.f32.mrf.mxu1 }
0x122e   : > { %2980 = vmatmul.mubr.msk.bf16.vlgmr.msra.gmra.mxu0 %vm1234_vm13, %v2378_v30  ;;  %3290 = vmatmul.mubr.msk.bf16.vlgmr.msra.gmra.mxu1 %vm1234_vm13, %v2378_v30 }
0x122f   : > { %v3278_v53 = vpop.f32.mrf.mxu1  ;;  %3303 = vmatprep.mubr.msk.bf16.mxu1 %vm3693_vm9, %v5031_v35  ;;  %2601 = vmatprep.mubr.bf16.mxu0 %v5034_v17 }
0x12ee   : > { %v4833_v7 = vpop.f32.mrf.mxu0  ;;  %v4835_v59 = vpop.f32.mrf.mxu1 }
0x12ef   : > { %2521 = vrot.lane.b32.xlu0 %v4833_v7, %s5047_s11  ;;  %2543 = vrot.lane.b32.xlu1 %v4833_v7, %s5048_s9 }
0x12f0   : > { %v4841_v23 = vpop.f32.mrf.mxu0  ;;  %v3291_v38 = vpop.f32.mrf.mxu1 }
0x12f1   : > { %v3485_v61 = vpack.i.bf16 %v4835_v59, %v4841_v23 }
0x12f2   : > { %v2420_v43 = vpop.f32.mrf.mxu0  ;;  %v2460_v12 = vpop.f32.mrf.mxu1 }
0x12f3   : > { %2499 = vrot.lane.b32.xlu0 %v4833_v7, %s5049_s10  ;;  %2532 = vrot.lane.b32.xlu1 %v4833_v7, %s5050_s20 }
0x12f4   : > { %v2421_v9 = vpop.f32.mrf.mxu0  ;;  %v3292_v5 = vpop.f32.mrf.mxu1 }
0x12f7   : > { %2477 = vrot.lane.b32.xlu0 %v4833_v7, %s3688_s18  ;;  %2510 = vrot.lane.b32.xlu1 %v4833_v7, %s3685_s15 }
0x12fb   : > { %3486 = vrot.lane.b32.xlu1 %v3485_v61, %s5050_s20  ;;  %3476 = vrot.lane.b32.xlu0 %v3485_v61, %s5048_s9 }
0x12ff   : > { %3496 = vrot.lane.b32.xlu1 %v3485_v61, %s3685_s15  ;;  %3481 = vrot.lane.b32.xlu0 %v3485_v61, %s5047_s11  ;;  %s2874_s15 = sshll.u32 %s5072_s28, 3 }
0x1303   : > { %3506 = vrot.lane.b32.xlu1 %v3485_v61, %s5009_s25  ;;  %3491 = vrot.lane.b32.xlu0 %v3485_v61, %s5049_s10 }
0x1307   : > { %2488 = vrot.lane.b32.xlu1 %v4833_v7, %s5009_s25  ;;  %3501 = vrot.lane.b32.xlu0 %v3485_v61, %s3688_s18  ;;  %s317_s25 = scalar_lea.vmem %s4957_s7, %s2874_s15 }
0x130b   : > { %2466 = vrot.lane.b32.xlu1 %v4833_v7, %s3690_s19  ;;  %3511 = vrot.lane.b32.xlu0 %v3485_v61, %s3690_s19 }
0x130f   : > { %2772 = vrot.lane.b32.xlu0 %v4783_v31, %s3700_s17 }
0x1361   : > { %v2522_v58 = vpop.permute.xlu0 %2521  ;;  %v2544_v14 = vpop.permute.xlu1 %2543 }
0x1365   : > { %v2500_v15 = vpop.permute.xlu0 %2499  ;;  %v2533_v50 = vpop.permute.xlu1 %2532 }
0x1369   : > { %v2478_v48 = vpop.permute.xlu0 %2477  ;;  %v2511_v4 = vpop.permute.xlu1 %2510 }
0x136d   : > { %v3487_v1 = vpop.permute.xlu1 %3486  ;;  %v3477_v13 = vpop.permute.xlu0 %3476 }
0x136e   : > { %v3479_v57 = vunpack.i.h.bf16 %v3477_v13  ;;  %v3478_v6 = vunpack.i.l.bf16 %v3477_v13  ;;  %v3489_v32 = vunpack.i.h.bf16 %v3487_v1  ;;  %v3488_v39 = vunpack.i.l.bf16 %v3487_v1 }
0x1370   : > { %v2568_v56 = vpack.c.bf16 %v5033_v24, %v3479_v57  ;;  %v2549_v40 = vsel %vm530_vm0, %v2544_v14, %v3478_v6  ;;  %v2550_v26 = vsel %vm530_vm0, %v3478_v6, %v3479_v57  ;;  %v2538_v44 = vsel %vm518_vm2, %v2533_v50, %v3488_v39 }
0x1371   : > { %v2566_v31 = vpack.c.bf16 %v5033_v24, %v2549_v40  ;;  %v3497_v27 = vpop.permute.xlu1 %3496  ;;  %v3482_v34 = vpop.permute.xlu0 %3481  ;;  %v2567_v36 = vpack.c.bf16 %v5033_v24, %v2550_v26  ;;  %v2539_v62 = vsel %vm518_vm2, %v3488_v39, %v3489_v32  ;;  %vm5051_vm0 = vcmask 1031168  }
0x1372   : > { %v3484_v49 = vunpack.i.h.bf16 %v3482_v34  ;;  %v3483_v42 = vunpack.i.l.bf16 %v3482_v34  ;;  %3294 = vmatpush3.bf16.msra.mxu1 %v2568_v56  ;;  %v3498_v19 = vunpack.i.l.bf16 %v3497_v27  ;;  %v3499_v45 = vunpack.i.h.bf16 %v3497_v27 }
0x1373   : > { %2575 = vmatprep.subr.bf16.mxu0 %v2567_v36  ;;  %3295 = vmatprep.subr.bf16.mxu1 %v5031_v35  ;;  %vm2776_vm2 = vcmask 261120  }
0x1374   : > { %v2565_v46 = vpack.c.bf16 %v3489_v32, %v3484_v49  ;;  %v2527_v63 = vsel %vm506_vm1, %v2522_v58, %v3483_v42  ;;  %2576 = vmatpush1.bf16.msra.mxu0 %v2566_v31  ;;  %v2528_v30 = vsel %vm506_vm1, %v3483_v42, %v3484_v49  ;;  %v2516_v9 = vsel %vm494_vm3, %v2511_v4, %v3498_v19  ;;  %vm5052_vm1 = vmmov %vm5051_vm0 }
0x1375   : > { %v2563_v24 = vpack.c.bf16 %v2538_v44, %v2527_v63  ;;  %v3507_v22 = vpop.permute.xlu1 %3506  ;;  %v3492_v53 = vpop.permute.xlu0 %3491  ;;  %v2564_v38 = vpack.c.bf16 %v2539_v62, %v2528_v30  ;;  %v2517_v1 = vsel %vm494_vm3, %v3498_v19, %v3499_v45 }
0x1376   : > { %v3494_v43 = vunpack.i.h.bf16 %v3492_v53  ;;  %v3493_v12 = vunpack.i.l.bf16 %v3492_v53  ;;  %3296 = vmatpush3.bf16.msra.mxu1 %v2565_v46  ;;  %v3509_v5 = vunpack.i.h.bf16 %v3507_v22  ;;  %v3508_v61 = vunpack.i.l.bf16 %v3507_v22 }
0x1377   : > { %2577 = vmatprep.subr.bf16.mxu0 %v2564_v38  ;;  %3297 = vmatprep.subr.bf16.mxu1 %v5031_v35 }
0x1378   : > { %v2562_v58 = vpack.c.bf16 %v3499_v45, %v3494_v43  ;;  %v2505_v14 = vsel %vm482_vm4, %v2500_v15, %v3493_v12  ;;  %2578 = vmatpush1.bf16.msra.mxu0 %v2563_v24  ;;  %v2506_v50 = vsel %vm482_vm4, %v3493_v12, %v3494_v43  ;;  %v2495_v56 = vsel %vm470_vm5, %v3508_v61, %v3509_v5 }
0x1379   : > { %v2560_v13 = vpack.c.bf16 %v2516_v9, %v2505_v14  ;;  %v2489_v57 = vpop.permute.xlu1 %2488  ;;  %v3502_v6 = vpop.permute.xlu0 %3501  ;;  %v2561_v32 = vpack.c.bf16 %v2517_v1, %v2506_v50 }
0x137a   : > { %v3504_v4 = vunpack.i.h.bf16 %v3502_v6  ;;  %v3503_v39 = vunpack.i.l.bf16 %v3502_v6  ;;  %3298 = vmatpush3.bf16.msra.mxu1 %v2562_v58  ;;  %v2494_v15 = vsel %vm470_vm5, %v2489_v57, %v3508_v61 }
0x137b   : > { %2579 = vmatprep.subr.bf16.mxu0 %v2561_v32  ;;  %3299 = vmatprep.subr.bf16.mxu1 %v5031_v35 }
0x137c   : > { %v2559_v40 = vpack.c.bf16 %v3509_v5, %v3504_v4  ;;  %v2483_v26 = vsel %vm5051_vm0, %v2478_v48, %v3503_v39  ;;  %2580 = vmatpush1.bf16.msra.mxu0 %v2560_v13  ;;  %v2484_v31 = vsel %vm5052_vm1, %v3503_v39, %v3504_v4 }
0x137d   : > { %v2557_v27 = vpack.c.bf16 %v2494_v15, %v2483_v26  ;;  %v3512_v34 = vpop.permute.xlu0 %3511  ;;  %v2558_v36 = vpack.c.bf16 %v2495_v56, %v2484_v31  ;;  %v2467_v44 = vpop.permute.xlu1 %2466 }
0x137e   : > { %v3514_v49 = vunpack.i.h.bf16 %v3512_v34  ;;  %v3513_v42 = vunpack.i.l.bf16 %v3512_v34  ;;  %3300 = vmatpush3.bf16.msra.mxu1 %v2559_v40 }
0x137f   : > { %2581 = vmatprep.subr.bf16.mxu0 %v2558_v36  ;;  %3301 = vmatprep.subr.bf16.mxu1 %v5031_v35 }
0x1380   : > { %v2556_v19 = vpack.c.bf16 %v3514_v49, %v4835_v59  ;;  %v2472_v62 = vsel %vm446_vm7, %v2467_v44, %v3513_v42  ;;  %2582 = vmatpush1.bf16.msra.mxu0 %v2557_v27  ;;  %v2473_v48 = vsel %vm446_vm7, %v3513_v42, %v3514_v49  ;;  %v3673_v59 = vld [vmem:[%s4951_s1 + $0xc] sm:$0xf] }
0x1381   : > { %v2554_v45 = vpack.c.bf16 %v2472_v62, %v4833_v7  ;;  %v2773_v46 = vpop.permute.xlu0 %2772  ;;  %v2555_v63 = vpack.c.bf16 %v2473_v48, %v4841_v23 }
0x1382   : > { %v2775_v35 = vsel %vm1038_vm10, %v3993_v47, %v2773_v46  ;;  %3302 = vmatpush3.bf16.msra.mxu1 %v2556_v19  ;;  %v5053_v47 = vld [vmem:[#allocation2_spill] sm:$0xff] }
0x1383   : > { %2777 = vst.msk [vmem:[%s317_s25] sm:$0xff] %vm2776_vm2, %v2775_v35  ;;  %2583 = vmatprep.subr.bf16.mxu0 %v2555_v63  ;;  %2984 = vmatprep.subr.msk.bf16.mxu1 %vm1238_vm11, %v4312_v54  ;;  %v5054_v54 = vld [vmem:[#allocation3_spill] sm:$0xff] }
0x1384   : > { %2584 = vmatpush1.bf16.msra.mxu0 %v2554_v45 }
0x1385   : > { %3304 = vmatmul.mubr.msk.bf16.vlgmr.msra.gmra.mxu1 %vm551_vm8, %v3673_v59  ;;  %2686 = vmatprep.subr.bf16.mxu0 %v4360_v52  ;;  %v5058_v52 = vld [vmem:[#allocation7_spill] sm:$0xff] }
0x1386   : > { %2740 = vmatpush1.bf16.msra.mxu1 %v4322_v33  ;;  %2759 = vmatprep.mubr.bf16.mxu1 %v5034_v17  ;;  %v5055_v33 = vld [vmem:[#allocation4_spill] sm:$0xff] }
0x1387   : > { %2982 = vmatmul.mubr.msk.bf16.vlgmr.msra.gmra.mxu0 %vm551_vm8, %v3673_v59  ;;  %2741 = vmatprep.subr.bf16.mxu1 %v4328_v2  ;;  %v5056_v2 = vld [vmem:[#allocation5_spill] sm:$0xff] }
0x1388   : > { %2687 = vmatpush1.bf16.msra.mxu0 %v4367_v0  ;;  %v5059_v0 = vld [vmem:[#allocation8_spill] sm:$0xff] }
0x1389   : > { %2688 = vmatprep.subr.bf16.mxu0 %v4374_v10  ;;  %v5060_v10 = vld [vmem:[#allocation9_spill] sm:$0xff] }
0x138a   : > { %2742 = vmatpush1.bf16.msra.mxu1 %v4333_v8  ;;  %v5057_v8 = vld [vmem:[#allocation6_spill] sm:$0xff] }
0x138c   : > { %2689 = vmatpush1.bf16.msra.mxu0 %v4379_v3  ;;  %v5061_v3 = vld [vmem:[#allocation10_spill] sm:$0xff] }
0x138d   : > { %2690 = vmatprep.subr.bf16.mxu0 %v4405_v41  ;;  %v5063_v41 = vld [vmem:[#allocation12_spill] sm:$0xff] }
0x1390   : > { %2691 = vmatpush1.bf16.msra.mxu0 %v4400_v60  ;;  %v5062_v60 = vld [vmem:[#allocation11_spill] sm:$0xff] }
0x1391   : > { %2692 = vmatprep.subr.bf16.mxu0 %v4419_v21  ;;  %v5065_v21 = vld [vmem:[#allocation14_spill] sm:$0xff] }
0x1394   : > { %2693 = vmatpush1.bf16.msra.mxu0 %v4414_v16  ;;  %v5064_v16 = vld [vmem:[#allocation13_spill] sm:$0xff] }
0x1395   : > { %2694 = vmatprep.subr.bf16.mxu0 %v4445_v51  ;;  %v5067_v51 = vld [vmem:[#allocation16_spill] sm:$0xff] }
0x1398   : > { %2695 = vmatpush1.bf16.msra.mxu0 %v4440_v20  ;;  %v5066_v20 = vld [vmem:[#allocation15_spill] sm:$0xff] }
0x1399   : > { %2696 = vmatprep.subr.bf16.mxu0 %v4454_v29 }
0x139c   : > { %2697 = vmatpush1.bf16.msra.mxu0 %v4459_v55 }
0x139d   : > { %2698 = vmatprep.subr.bf16.mxu0 %v4466_v37 }
0x13a0   : > { %2699 = vmatpush1.bf16.msra.mxu0 %v4471_v11 }
0x13a1   : > { %2700 = vmatprep.subr.bf16.mxu0 %v4478_v28 }
0x13a4   : > { %2701 = vmatpush1.bf16.msra.mxu0 %v4483_v25 }
0x13a5   : > { %2702 = vmatprep.subr.bf16.mxu0 %v4490_v18 }
0x13a8   : > { %2703 = vmatpush2.bf16.msra.mxu0 %v5053_v47 }
0x13a9   : > { %2704 = vmatprep.subr.bf16.mxu0 %v5054_v54 }
0x13ac   : > { %2705 = vmatpush2.bf16.msra.mxu0 %v5055_v33 }
0x13ad   : > { %2706 = vmatprep.subr.bf16.mxu0 %v5056_v2 }
0x13b0   : > { %2707 = vmatpush2.bf16.msra.mxu0 %v5057_v8 }
0x13b1   : > { %2708 = vmatprep.subr.bf16.mxu0 %v5058_v52 }
0x13b4   : > { %2709 = vmatpush2.bf16.msra.mxu0 %v5059_v0 }
0x13b5   : > { %2710 = vmatprep.subr.bf16.mxu0 %v5060_v10 }
0x13b8   : > { %2711 = vmatpush2.bf16.msra.mxu0 %v5061_v3 }
0x13b9   : > { %2712 = vmatprep.subr.bf16.mxu0 %v5062_v60 }
0x13bc   : > { %2713 = vmatpush2.bf16.msra.mxu0 %v5063_v41 }
0x13bd   : > { %2714 = vmatprep.subr.bf16.mxu0 %v5064_v16 }
0x13c0   : > { %2715 = vmatpush2.bf16.msra.mxu0 %v5065_v21 }
0x13c1   : > { %2716 = vmatprep.subr.bf16.mxu0 %v5066_v20 }
0x13c4   : > { %2717 = vmatpush2.bf16.msra.mxu0 %v5067_v51 }
0x1445   : > { %v2644_v29 = vpop.f32.mrf.mxu1 }
0x1446   : > { %v2652_v55 = vand.u32 2147483647, %v2644_v29  ;;  %vm2673_vm3 = vcmp.ge.f32.partialorder %v2644_v29, 0.0 }
0x1447   : > { %v2603_v37 = vpop.f32.mrf.mxu0  ;;  %v3305_v11 = vpop.f32.mrf.mxu1 }
0x1448   : > { %v2655_v28 = vsub.f32 0.0, %v2652_v55  ;;  %v2650_v25 = vand.u32 2147483647, %v2603_v37  ;;  %vm2671_vm4 = vcmp.ge.f32.partialorder %v2603_v37, 0.0 }
0x1449   : > { %v2605_v18 = vpop.f32.mrf.mxu0  ;;  %v2647_v17 = vpop.f32.mrf.mxu1 }
0x144a   : > { %v2660_v7 = vmul.f32 1.442695, %v2655_v28  ;;  %v2653_v23 = vsub.f32 0.0, %v2650_v25  ;;  %v2651_v30 = vand.u32 2147483647, %v2605_v18  ;;  %vm2672_vm5 = vcmp.ge.f32.partialorder %v2605_v18, 0.0 }
0x144b   : > { %v2607_v24 = vpop.f32.mrf.mxu0  ;;  %v3306_v22 = vpop.f32.mrf.mxu1 }
0x144c   : > { %3624 = vpow2.f32 %v2660_v7  ;;  %v2656_v53 = vmul.f32 1.442695, %v2653_v23  ;;  %v2654_v38 = vsub.f32 0.0, %v2651_v30 }
0x144d   : > { %v2608_v43 = vpop.f32.mrf.mxu0 }
0x144e   : > { %3626 = vpow2.f32 %v2656_v53  ;;  %v2658_v12 = vmul.f32 1.442695, %v2654_v38 }
0x1450   : > { %3628 = vpow2.f32 %v2658_v12 }
0x1459   : > { %v3625_v9 = vpop.eup %3624 }
0x145a   : > { %v2664_v5 = vadd.f32 1.0, %v3625_v9 }
0x145b   : > { %v3627_v61 = vpop.eup %3626 }
0x145c   : > { %3630 = vrcp.f32 %v2664_v5  ;;  %v2662_v58 = vadd.f32 1.0, %v3627_v61 }
0x145d   : > { %v3629_v14 = vpop.eup %3628 }
0x145e   : > { %3632 = vrcp.f32 %v2662_v58  ;;  %v2663_v50 = vadd.f32 1.0, %v3629_v14 }
0x1460   : > { %3634 = vrcp.f32 %v2663_v50 }
0x1469   : > { %v3631_v1 = vpop.eup %3630 }
0x146a   : > { %v2676_v13 = vmul.f32 %v3631_v1, %v3625_v9 }
0x146b   : > { %v3633_v57 = vpop.eup %3632 }
0x146c   : > { %v2679_v6 = vsel %vm2673_vm3, %v3631_v1, %v2676_v13  ;;  %v2674_v32 = vmul.f32 %v3633_v57, %v3627_v61 }
0x146d   : > { %v3635_v4 = vpop.eup %3634  ;;  %v2682_v39 = vpack.c.bf16 %v2679_v6, %v2679_v6 }
0x146e   : > { %v2675_v56 = vmul.f32 %v3635_v4, %v3629_v14  ;;  %v2677_v15 = vsel %vm2671_vm4, %v3633_v57, %v2674_v32 }
0x146f   : > { %2985 = vmatmul.mubr.msk.bf16.vlgmr.msra.gmra.mxu1 %vm5068_vm6, %v2682_v39  ;;  %v2680_v31 = vpack.c.bf16 %v2677_v15, %v2677_v15 }
0x1470   : > { %v2678_v40 = vsel %vm2672_vm5, %v3635_v4, %v2675_v56 }
0x1471   : > { %v2681_v26 = vpack.c.bf16 %v2678_v40, %v2678_v40 }
0x1473   : > { %2718 = vmatprep.mubr.bf16.mxu0 %v2681_v26 }
0x1474   : > { %2719 = vmatmul.mubr.bf16.vlgmr.msra.gmra.mxu0 %v2680_v31 }
0x152f   : > { %v2761_v27 = vpop.f32.mrf.mxu1 }
0x1531   : > { %v2763_v34 = vpop.f32.mrf.mxu1 }
0x1533   : > { %v2765_v36 = vpop.f32.mrf.mxu1 }
0x1534   : > { %v2720_v49 = vpop.f32.mrf.mxu0 }
0x1535   : > { %v2762_v42 = vadd.f32 %v2761_v27, %v2720_v49  ;;  %v2766_v44 = vpop.f32.mrf.mxu1 }
0x1536   : > { %v2722_v19 = vpop.f32.mrf.mxu0 }
0x1537   : > { %2986 = vst [vmem:[%s4694_s21 + $0x10] sm:$0xff] %v2762_v42  ;;  %v2764_v62 = vadd.f32 %v2763_v34, %v2722_v19 }
0x1538   : > { %v2724_v48 = vpop.f32.mrf.mxu0 }
0x1539   : > { %2987 = vst [vmem:[%s4694_s21 + $0x18] sm:$0xff] %v2764_v62 }
0x153a   : > { %v2725_v45 = vpop.f32.mrf.mxu0 }
0x153b PF: > { %s19_s27 = sadd.s32 1, %s3680_s27  }
0x153c   : > { %p16_p5 = scmp.ge.s32.totalorder %s19_s27, 4  }
0x153e   :  { %18 = sbr.rel (!%p16_p5) target bundleno = 1 (0x1), region = 95 }

</bundles_post_ra>
